<compile_context>
chip_gen: v7x
topology: tpu7x:2x2x1
jax: 0.10.0
libtpu: 0.0.40
codegen_flags: <defaults>
</compile_context>

<pallas_src>
import functools

import jax
import jax.numpy as jnp
import numpy as np
from jax.experimental import pallas as pl
from jax.experimental.pallas import tpu as pltpu


# ----------------------------------------------------------------------------
# Fused kernel: one batch item per grid step.
# ----------------------------------------------------------------------------
def _up_kernel(x1_ref, x2_ref, mask_ref, w1_ref, b1_ref, w2_ref, b2_ref,
               aup_ref, o_ref, *, H, W):
    HW = H * W
    mask = mask_ref[...]                               # (9, HW) f32 validity

    def im2col_bf16(v):
        # v: (C, HW) f32  ->  (9*C, HW) bf16 column slab for a 3x3/pad=1 conv.
        # Spatial shifts are circular rolls along the flat lane axis; positions
        # whose source lies outside the image are zeroed by the mask, so the
        # wrap-around never leaks wrong data.
        cols = []
        for kh in range(3):
            for kw in range(3):
                s = (kh - 1) * W + (kw - 1)            # flat spatial shift
                k = kh * 3 + kw
                if s == 0:
                    cols.append(v)                     # center tap: no shift
                else:
                    rolled = pltpu.roll(v, shift=(-s) % HW, axis=1)
                    cols.append(rolled * mask[k:k + 1, :])
        return jnp.concatenate(cols, axis=0).astype(jnp.bfloat16)

    # torch: x = cat([x2, x1], dim=1)  -- done in VMEM, never materialized in HBM.
    x = jnp.concatenate([x2_ref[0], x1_ref[0]], axis=0)        # (Cin, HW) f32

    # Conv1 + folded BN + ReLU : (Cmid, 9*Cin) @ (9*Cin, HW)
    y1 = jnp.dot(w1_ref[...], im2col_bf16(x),
                 preferred_element_type=jnp.float32) + b1_ref[...]
    y1 = jnp.maximum(y1, 0.0)                                  # (Cmid, HW) f32

    # Conv2 + folded BN + ReLU : (Cout, 9*Cmid) @ (9*Cmid, HW)
    y2 = jnp.dot(w2_ref[...], im2col_bf16(y1),
                 preferred_element_type=jnp.float32) + b2_ref[...]
    y2 = jnp.maximum(y2, 0.0)                                  # (Cout, HW) f32

    # Bilinear 2x upsample (align_corners=True) as one MXU matmul:
    # (Cout, HW) @ (HW, Ho*Wo)  -> lane-dense (1024-wide) output store.
    o_ref[0] = jnp.dot(y2.astype(jnp.bfloat16), aup_ref[...],
                       preferred_element_type=jnp.float32)


# ----------------------------------------------------------------------------
# Host-side constant builders
# ----------------------------------------------------------------------------
def _make_shift_masks(H, W):
    """(9, H*W) f32: 1 where the 3x3 tap (kh,kw) source pixel is in-bounds."""
    ys, xs = np.meshgrid(np.arange(H), np.arange(W), indexing="ij")
    masks = np.zeros((9, H * W), np.float32)
    for kh in range(3):
        for kw in range(3):
            dh, dw = kh - 1, kw - 1
            valid = ((ys + dh >= 0) & (ys + dh < H) &
                     (xs + dw >= 0) & (xs + dw < W))
            masks[kh * 3 + kw] = valid.reshape(-1).astype(np.float32)
    return jnp.asarray(masks)


def _interp_matrix(n_in, n_out):
    # bilinear, align_corners=True:  src = i * (n_in - 1) / (n_out - 1)
    if n_out == 1:
        src = np.zeros((1,), np.float64)
    else:
        src = np.arange(n_out, dtype=np.float64) * (n_in - 1) / (n_out - 1)
    lo = np.clip(np.floor(src).astype(np.int64), 0, n_in - 1)
    hi = np.minimum(lo + 1, n_in - 1)
    frac = (src - lo).astype(np.float32)
    A = np.zeros((n_out, n_in), np.float32)
    A[np.arange(n_out), lo] += (1.0 - frac)
    A[np.arange(n_out), hi] += frac
    return A


def _make_upsample_matrix(H, W):
    """(H*W, 2H*2W) interpolation matrix: out_flat = y_flat @ A."""
    ah = _interp_matrix(H, 2 * H)          # (Ho, H)
    aw = _interp_matrix(W, 2 * W)          # (Wo, W)
    A = np.kron(ah, aw)                    # (Ho*Wo, H*W)
    return jnp.asarray(A.T, dtype=jnp.bfloat16)


def fold_bn(w, b, gamma, beta, mean, var, eps=1e-5):
    scale = gamma / jnp.sqrt(var + eps)    # (Cout,)
    return w * scale, (b - mean) * scale + beta


# ----------------------------------------------------------------------------
# Full Up.forward (inputs/outputs are NCHW like the torch module)
# ----------------------------------------------------------------------------
def up_forward(x1_nchw, x2_nchw, w1, b1, w2, b2):
    N, C1, H, W = x1_nchw.shape
    C2 = x2_nchw.shape[1]
    Cin = C1 + C2
    Cmid = w1.shape[-1]
    Cout = w2.shape[-1]
    HW = H * W
    Ho, Wo = 2 * H, 2 * W

    # Lane-dense, channel-first activations: (N, C, H*W)
    x1f = x1_nchw.reshape(N, C1, HW)
    x2f = x2_nchw.reshape(N, C2, HW)

    # (Cout, 9*Cin) weight slabs matching the kernel's im2col row order
    # (tap-major, channel-minor); cast once to bf16 on the host side.
    w1k = jnp.transpose(w1, (3, 0, 1, 2)).reshape(Cmid, 9 * Cin).astype(jnp.bfloat16)
    w2k = jnp.transpose(w2, (3, 0, 1, 2)).reshape(Cout, 9 * Cmid).astype(jnp.bfloat16)
    b1k = b1.reshape(Cmid, 1).astype(jnp.float32)
    b2k = b2.reshape(Cout, 1).astype(jnp.float32)

    masks = _make_shift_masks(H, W)            # (9, HW) f32
    aup = _make_upsample_matrix(H, W)          # (HW, Ho*Wo) bf16

    kern = functools.partial(_up_kernel, H=H, W=W)

    out = pl.pallas_call(
        kern,
        out_shape=jax.ShapeDtypeStruct((N, Cout, Ho * Wo), jnp.float32),
        grid_spec=pltpu.PrefetchScalarGridSpec(
            num_scalar_prefetch=0,
            grid=(N,),
            in_specs=[
                pl.BlockSpec((1, C1, HW), lambda n: (n, 0, 0)),
                pl.BlockSpec((1, C2, HW), lambda n: (n, 0, 0)),
                pl.BlockSpec((9, HW), lambda n: (0, 0)),
                pl.BlockSpec((Cmid, 9 * Cin), lambda n: (0, 0)),
                pl.BlockSpec((Cmid, 1), lambda n: (0, 0)),
                pl.BlockSpec((Cout, 9 * Cmid), lambda n: (0, 0)),
                pl.BlockSpec((Cout, 1), lambda n: (0, 0)),
                pl.BlockSpec((HW, Ho * Wo), lambda n: (0, 0)),
            ],
            out_specs=pl.BlockSpec((1, Cout, Ho * Wo), lambda n: (n, 0, 0)),
        ),
        compiler_params=pltpu.CompilerParams(
            dimension_semantics=("parallel",)),
    )(x1f, x2f, masks, w1k, b1k, w2k, b2k, aup)

    # (N, Cout, Ho*Wo) -> NCHW, no transpose needed.
    return out.reshape(N, Cout, Ho, Wo)


# ----------------------------------------------------------------------------
# Independent full-precision reference (XLA conv + einsum interpolation)
# ----------------------------------------------------------------------------
def ref_forward(x1_nchw, x2_nchw, w1, b1, w2, b2):
    x1 = jnp.transpose(x1_nchw, (0, 2, 3, 1))
    x2 = jnp.transpose(x2_nchw, (0, 2, 3, 1))
    x = jnp.concatenate([x2, x1], axis=-1)
    dn = ("NHWC", "HWIO", "NHWC")
    hp = jax.lax.Precision.HIGHEST
    y = jnp.maximum(jax.lax.conv_general_dilated(
        x, w1, (1, 1), "SAME", dimension_numbers=dn, precision=hp) + b1, 0.0)
    y = jnp.maximum(jax.lax.conv_general_dilated(
        y, w2, (1, 1), "SAME", dimension_numbers=dn, precision=hp) + b2, 0.0)
    N, H, W, C = y.shape
    ah = jnp.asarray(_interp_matrix(H, 2 * H))
    aw = jnp.asarray(_interp_matrix(W, 2 * W))
    out = jnp.einsum("ih,jw,nhwc->nijc", ah, aw, y)
    return jnp.transpose(out, (0, 3, 1, 2))


if __name__ == "__main__":
    # Up(in_channels=16, out_channels=8); x1/x2 each carry 8 channels.
    N, C_total, C_out, H, W = 2, 16, 8, 16, 16
    C_mid = C_total // 4

    keys = jax.random.split(jax.random.PRNGKey(0), 14)
    x1 = jax.random.normal(keys[0], (N, C_total // 2, H, W), jnp.float32)
    x2 = jax.random.normal(keys[1], (N, C_total // 2, H, W), jnp.float32)

    # Conv1 (C_total -> C_mid) + BN params (deterministic synthetic init)
    w1 = 0.1 * jax.random.normal(keys[2], (3, 3, C_total, C_mid), jnp.float32)
    b1 = 0.1 * jax.random.normal(keys[3], (C_mid,), jnp.float32)
    g1 = 1.0 + 0.1 * jax.random.normal(keys[4], (C_mid,), jnp.float32)
    be1 = 0.1 * jax.random.normal(keys[5], (C_mid,), jnp.float32)
    rm1 = 0.1 * jax.random.normal(keys[6], (C_mid,), jnp.float32)
    rv1 = 0.5 + jax.random.uniform(keys[7], (C_mid,), jnp.float32)

    # Conv2 (C_mid -> C_out) + BN params
    w2 = 0.1 * jax.random.normal(keys[8], (3, 3, C_mid, C_out), jnp.float32)
    b2 = 0.1 * jax.random.normal(keys[9], (C_out,), jnp.float32)
    g2 = 1.0 + 0.1 * jax.random.normal(keys[10], (C_out,), jnp.float32)
    be2 = 0.1 * jax.random.normal(keys[11], (C_out,), jnp.float32)
    rm2 = 0.1 * jax.random.normal(keys[12], (C_out,), jnp.float32)
    rv2 = 0.5 + jax.random.uniform(keys[13], (C_out,), jnp.float32)

    w1f, b1f = fold_bn(w1, b1, g1, be1, rm1, rv1)
    w2f, b2f = fold_bn(w2, b2, g2, be2, rm2, rv2)

    out = up_forward(x1, x2, w1f, b1f, w2f, b2f)
    out = jax.block_until_ready(out)
    assert out.shape == (N, C_out, 2 * H, 2 * W), out.shape

    ref = jax.block_until_ready(ref_forward(x1, x2, w1f, b1f, w2f, b2f))
    # Kernel uses bf16 MXU operands (f32 accumulation) -> slightly looser tol.
    np.testing.assert_allclose(np.asarray(out), np.asarray(ref),
                               rtol=2e-2, atol=2e-2)
    print("KERNEL_OK")
</pallas_src>

<mosaic_0001>
module attributes {stable_mosaic.version = 11 : i64} {
  func.func @_up_kernel(%arg0: i32, %arg1: memref<1x8x256xf32, #tpu.memory_space<vmem>>, %arg2: memref<1x8x256xf32, #tpu.memory_space<vmem>>, %arg3: memref<9x256xf32, #tpu.memory_space<vmem>>, %arg4: memref<4x144xbf16, #tpu.memory_space<vmem>>, %arg5: memref<4x1xf32, #tpu.memory_space<vmem>>, %arg6: memref<8x36xbf16, #tpu.memory_space<vmem>>, %arg7: memref<8x1xf32, #tpu.memory_space<vmem>>, %arg8: memref<256x1024xbf16, #tpu.memory_space<vmem>>, %arg9: memref<1x8x1024xf32, #tpu.memory_space<vmem>>) attributes {dimension_semantics = [#tpu.dimension_semantics<parallel>], iteration_bounds = array<i64: 2>, scalar_prefetch = 0 : i64, scratch_operands = 0 : i64, tpu.core_type = #tpu.core_type<tc>, window_params = [{transform_indices = @transform_0, window_bounds = array<i64: 1, 8, 256>}, {transform_indices = @transform_1, window_bounds = array<i64: 1, 8, 256>}, {pipeline_mode = #tpu.pipeline_mode<synchronous>, transform_indices = @transform_2, window_bounds = array<i64: 9, 256>}, {pipeline_mode = #tpu.pipeline_mode<synchronous>, transform_indices = @transform_3, window_bounds = array<i64: 4, 144>}, {pipeline_mode = #tpu.pipeline_mode<synchronous>, transform_indices = @transform_4, window_bounds = array<i64: 4, 1>}, {pipeline_mode = #tpu.pipeline_mode<synchronous>, transform_indices = @transform_5, window_bounds = array<i64: 8, 36>}, {pipeline_mode = #tpu.pipeline_mode<synchronous>, transform_indices = @transform_6, window_bounds = array<i64: 8, 1>}, {pipeline_mode = #tpu.pipeline_mode<synchronous>, transform_indices = @transform_7, window_bounds = array<i64: 256, 1024>}, {transform_indices = @transform_8, window_bounds = array<i64: 1, 8, 1024>}]} {
    %c0 = arith.constant 0 : index
    %c0_0 = arith.constant 0 : index
    %0 = vector.load %arg3[%c0, %c0_0] : memref<9x256xf32, #tpu.memory_space<vmem>>, vector<9x256xf32>
    %c0_1 = arith.constant 0 : index
    %c0_2 = arith.constant 0 : index
    %c0_3 = arith.constant 0 : index
    %1 = vector.load %arg2[%c0_1, %c0_2, %c0_3] : memref<1x8x256xf32, #tpu.memory_space<vmem>>, vector<1x8x256xf32>
    %2 = vector.shape_cast %1 : vector<1x8x256xf32> to vector<8x256xf32>
    %c0_4 = arith.constant 0 : index
    %c0_5 = arith.constant 0 : index
    %c0_6 = arith.constant 0 : index
    %3 = vector.load %arg1[%c0_4, %c0_5, %c0_6] : memref<1x8x256xf32, #tpu.memory_space<vmem>>, vector<1x8x256xf32>
    %4 = vector.shape_cast %3 : vector<1x8x256xf32> to vector<8x256xf32>
    %5 = tpu.concatenate %2, %4 in 0 : vector<8x256xf32>, vector<8x256xf32> -> vector<16x256xf32>
    %c0_7 = arith.constant 0 : index
    %c0_8 = arith.constant 0 : index
    %6 = vector.load %arg4[%c0_7, %c0_8] : memref<4x144xbf16, #tpu.memory_space<vmem>>, vector<4x144xbf16>
    %c17_i32 = arith.constant 17 : i32
    %7 = tpu.dynamic_rotate %5 by %c17_i32 dim 1 : vector<16x256xf32>, i32 -> vector<16x256xf32>
    %8 = vector.extract_strided_slice %0 {offsets = [0, 0], sizes = [1, 256], strides = [1, 1]} : vector<9x256xf32> to vector<1x256xf32>
    %9 = vector.broadcast %8 : vector<1x256xf32> to vector<16x256xf32>
    %10 = arith.mulf %7, %9 : vector<16x256xf32>
    %c16_i32 = arith.constant 16 : i32
    %11 = tpu.dynamic_rotate %5 by %c16_i32 dim 1 : vector<16x256xf32>, i32 -> vector<16x256xf32>
    %12 = vector.extract_strided_slice %0 {offsets = [1, 0], sizes = [1, 256], strides = [1, 1]} : vector<9x256xf32> to vector<1x256xf32>
    %13 = vector.broadcast %12 : vector<1x256xf32> to vector<16x256xf32>
    %14 = arith.mulf %11, %13 : vector<16x256xf32>
    %c15_i32 = arith.constant 15 : i32
    %15 = tpu.dynamic_rotate %5 by %c15_i32 dim 1 : vector<16x256xf32>, i32 -> vector<16x256xf32>
    %16 = vector.extract_strided_slice %0 {offsets = [2, 0], sizes = [1, 256], strides = [1, 1]} : vector<9x256xf32> to vector<1x256xf32>
    %17 = vector.broadcast %16 : vector<1x256xf32> to vector<16x256xf32>
    %18 = arith.mulf %15, %17 : vector<16x256xf32>
    %c1_i32 = arith.constant 1 : i32
    %19 = tpu.dynamic_rotate %5 by %c1_i32 dim 1 : vector<16x256xf32>, i32 -> vector<16x256xf32>
    %20 = vector.extract_strided_slice %0 {offsets = [3, 0], sizes = [1, 256], strides = [1, 1]} : vector<9x256xf32> to vector<1x256xf32>
    %21 = vector.broadcast %20 : vector<1x256xf32> to vector<16x256xf32>
    %22 = arith.mulf %19, %21 : vector<16x256xf32>
    %c255_i32 = arith.constant 255 : i32
    %23 = tpu.dynamic_rotate %5 by %c255_i32 dim 1 : vector<16x256xf32>, i32 -> vector<16x256xf32>
    %24 = vector.extract_strided_slice %0 {offsets = [5, 0], sizes = [1, 256], strides = [1, 1]} : vector<9x256xf32> to vector<1x256xf32>
    %25 = vector.broadcast %24 : vector<1x256xf32> to vector<16x256xf32>
    %26 = arith.mulf %23, %25 : vector<16x256xf32>
    %c241_i32 = arith.constant 241 : i32
    %27 = tpu.dynamic_rotate %5 by %c241_i32 dim 1 : vector<16x256xf32>, i32 -> vector<16x256xf32>
    %28 = vector.extract_strided_slice %0 {offsets = [6, 0], sizes = [1, 256], strides = [1, 1]} : vector<9x256xf32> to vector<1x256xf32>
    %29 = vector.broadcast %28 : vector<1x256xf32> to vector<16x256xf32>
    %30 = arith.mulf %27, %29 : vector<16x256xf32>
    %c240_i32 = arith.constant 240 : i32
    %31 = tpu.dynamic_rotate %5 by %c240_i32 dim 1 : vector<16x256xf32>, i32 -> vector<16x256xf32>
    %32 = vector.extract_strided_slice %0 {offsets = [7, 0], sizes = [1, 256], strides = [1, 1]} : vector<9x256xf32> to vector<1x256xf32>
    %33 = vector.broadcast %32 : vector<1x256xf32> to vector<16x256xf32>
    %34 = arith.mulf %31, %33 : vector<16x256xf32>
    %c239_i32 = arith.constant 239 : i32
    %35 = tpu.dynamic_rotate %5 by %c239_i32 dim 1 : vector<16x256xf32>, i32 -> vector<16x256xf32>
    %36 = vector.extract_strided_slice %0 {offsets = [8, 0], sizes = [1, 256], strides = [1, 1]} : vector<9x256xf32> to vector<1x256xf32>
    %37 = vector.broadcast %36 : vector<1x256xf32> to vector<16x256xf32>
    %38 = arith.mulf %35, %37 : vector<16x256xf32>
    %39 = tpu.concatenate %10, %14, %18, %22, %5, %26, %30, %34, %38 in 0 : vector<16x256xf32>, vector<16x256xf32>, vector<16x256xf32>, vector<16x256xf32>, vector<16x256xf32>, vector<16x256xf32>, vector<16x256xf32>, vector<16x256xf32>, vector<16x256xf32> -> vector<144x256xf32>
    %40 = arith.truncf %39 : vector<144x256xf32> to vector<144x256xbf16>
    %cst = arith.constant dense<0.000000e+00> : vector<4x256xf32>
    %41 = tpu.matmul %6, %40, %cst {dimension_numbers = #tpu.dot_dimension_numbers<[1], [0], [0], [1], [0, 0, 1, 1], [], []>} : vector<4x144xbf16>, vector<144x256xbf16>, vector<4x256xf32> -> vector<4x256xf32>
    %c0_9 = arith.constant 0 : index
    %c0_10 = arith.constant 0 : index
    %42 = vector.load %arg5[%c0_9, %c0_10] : memref<4x1xf32, #tpu.memory_space<vmem>>, vector<4x1xf32>
    %43 = vector.broadcast %42 : vector<4x1xf32> to vector<4x256xf32>
    %44 = arith.addf %41, %43 : vector<4x256xf32>
    %cst_11 = arith.constant 0.000000e+00 : f32
    %45 = vector.broadcast %cst_11 : f32 to vector<4x256xf32>
    %46 = arith.maximumf %44, %45 : vector<4x256xf32>
    %c0_12 = arith.constant 0 : index
    %c0_13 = arith.constant 0 : index
    %47 = vector.load %arg6[%c0_12, %c0_13] : memref<8x36xbf16, #tpu.memory_space<vmem>>, vector<8x36xbf16>
    %c17_i32_14 = arith.constant 17 : i32
    %48 = tpu.dynamic_rotate %46 by %c17_i32_14 dim 1 : vector<4x256xf32>, i32 -> vector<4x256xf32>
    %49 = vector.extract_strided_slice %0 {offsets = [0, 0], sizes = [1, 256], strides = [1, 1]} : vector<9x256xf32> to vector<1x256xf32>
    %50 = vector.broadcast %49 : vector<1x256xf32> to vector<4x256xf32>
    %51 = arith.mulf %48, %50 : vector<4x256xf32>
    %c16_i32_15 = arith.constant 16 : i32
    %52 = tpu.dynamic_rotate %46 by %c16_i32_15 dim 1 : vector<4x256xf32>, i32 -> vector<4x256xf32>
    %53 = vector.extract_strided_slice %0 {offsets = [1, 0], sizes = [1, 256], strides = [1, 1]} : vector<9x256xf32> to vector<1x256xf32>
    %54 = vector.broadcast %53 : vector<1x256xf32> to vector<4x256xf32>
    %55 = arith.mulf %52, %54 : vector<4x256xf32>
    %c15_i32_16 = arith.constant 15 : i32
    %56 = tpu.dynamic_rotate %46 by %c15_i32_16 dim 1 : vector<4x256xf32>, i32 -> vector<4x256xf32>
    %57 = vector.extract_strided_slice %0 {offsets = [2, 0], sizes = [1, 256], strides = [1, 1]} : vector<9x256xf32> to vector<1x256xf32>
    %58 = vector.broadcast %57 : vector<1x256xf32> to vector<4x256xf32>
    %59 = arith.mulf %56, %58 : vector<4x256xf32>
    %c1_i32_17 = arith.constant 1 : i32
    %60 = tpu.dynamic_rotate %46 by %c1_i32_17 dim 1 : vector<4x256xf32>, i32 -> vector<4x256xf32>
    %61 = vector.extract_strided_slice %0 {offsets = [3, 0], sizes = [1, 256], strides = [1, 1]} : vector<9x256xf32> to vector<1x256xf32>
    %62 = vector.broadcast %61 : vector<1x256xf32> to vector<4x256xf32>
    %63 = arith.mulf %60, %62 : vector<4x256xf32>
    %c255_i32_18 = arith.constant 255 : i32
    %64 = tpu.dynamic_rotate %46 by %c255_i32_18 dim 1 : vector<4x256xf32>, i32 -> vector<4x256xf32>
    %65 = vector.extract_strided_slice %0 {offsets = [5, 0], sizes = [1, 256], strides = [1, 1]} : vector<9x256xf32> to vector<1x256xf32>
    %66 = vector.broadcast %65 : vector<1x256xf32> to vector<4x256xf32>
    %67 = arith.mulf %64, %66 : vector<4x256xf32>
    %c241_i32_19 = arith.constant 241 : i32
    %68 = tpu.dynamic_rotate %46 by %c241_i32_19 dim 1 : vector<4x256xf32>, i32 -> vector<4x256xf32>
    %69 = vector.extract_strided_slice %0 {offsets = [6, 0], sizes = [1, 256], strides = [1, 1]} : vector<9x256xf32> to vector<1x256xf32>
    %70 = vector.broadcast %69 : vector<1x256xf32> to vector<4x256xf32>
    %71 = arith.mulf %68, %70 : vector<4x256xf32>
    %c240_i32_20 = arith.constant 240 : i32
    %72 = tpu.dynamic_rotate %46 by %c240_i32_20 dim 1 : vector<4x256xf32>, i32 -> vector<4x256xf32>
    %73 = vector.extract_strided_slice %0 {offsets = [7, 0], sizes = [1, 256], strides = [1, 1]} : vector<9x256xf32> to vector<1x256xf32>
    %74 = vector.broadcast %73 : vector<1x256xf32> to vector<4x256xf32>
    %75 = arith.mulf %72, %74 : vector<4x256xf32>
    %c239_i32_21 = arith.constant 239 : i32
    %76 = tpu.dynamic_rotate %46 by %c239_i32_21 dim 1 : vector<4x256xf32>, i32 -> vector<4x256xf32>
    %77 = vector.extract_strided_slice %0 {offsets = [8, 0], sizes = [1, 256], strides = [1, 1]} : vector<9x256xf32> to vector<1x256xf32>
    %78 = vector.broadcast %77 : vector<1x256xf32> to vector<4x256xf32>
    %79 = arith.mulf %76, %78 : vector<4x256xf32>
    %80 = tpu.concatenate %51, %55, %59, %63, %46, %67, %71, %75, %79 in 0 : vector<4x256xf32>, vector<4x256xf32>, vector<4x256xf32>, vector<4x256xf32>, vector<4x256xf32>, vector<4x256xf32>, vector<4x256xf32>, vector<4x256xf32>, vector<4x256xf32> -> vector<36x256xf32>
    %81 = arith.truncf %80 : vector<36x256xf32> to vector<36x256xbf16>
    %cst_22 = arith.constant dense<0.000000e+00> : vector<8x256xf32>
    %82 = tpu.matmul %47, %81, %cst_22 {dimension_numbers = #tpu.dot_dimension_numbers<[1], [0], [0], [1], [0, 0, 1, 1], [], []>} : vector<8x36xbf16>, vector<36x256xbf16>, vector<8x256xf32> -> vector<8x256xf32>
    %c0_23 = arith.constant 0 : index
    %c0_24 = arith.constant 0 : index
    %83 = vector.load %arg7[%c0_23, %c0_24] : memref<8x1xf32, #tpu.memory_space<vmem>>, vector<8x1xf32>
    %84 = vector.broadcast %83 : vector<8x1xf32> to vector<8x256xf32>
    %85 = arith.addf %82, %84 : vector<8x256xf32>
    %cst_25 = arith.constant 0.000000e+00 : f32
    %86 = vector.broadcast %cst_25 : f32 to vector<8x256xf32>
    %87 = arith.maximumf %85, %86 : vector<8x256xf32>
    %88 = arith.truncf %87 : vector<8x256xf32> to vector<8x256xbf16>
    %c0_26 = arith.constant 0 : index
    %c0_27 = arith.constant 0 : index
    %89 = vector.load %arg8[%c0_26, %c0_27] : memref<256x1024xbf16, #tpu.memory_space<vmem>>, vector<256x1024xbf16>
    %cst_28 = arith.constant dense<0.000000e+00> : vector<8x1024xf32>
    %90 = tpu.matmul %88, %89, %cst_28 {dimension_numbers = #tpu.dot_dimension_numbers<[1], [0], [0], [1], [0, 0, 1, 1], [], []>} : vector<8x256xbf16>, vector<256x1024xbf16>, vector<8x1024xf32> -> vector<8x1024xf32>
    %c0_29 = arith.constant 0 : index
    %c0_30 = arith.constant 0 : index
    %c0_31 = arith.constant 0 : index
    %91 = vector.load %arg9[%c0_29, %c0_30, %c0_31] : memref<1x8x1024xf32, #tpu.memory_space<vmem>>, vector<1x8x1024xf32>
    %92 = vector.shape_cast %91 : vector<1x8x1024xf32> to vector<8x1024xf32>
    %93 = vector.shape_cast %90 : vector<8x1024xf32> to vector<1x8x1024xf32>
    tpu.vector_store %arg9[%c0_29, %c0_30, %c0_31], %93 {strides = array<i32>} : memref<1x8x1024xf32, #tpu.memory_space<vmem>>, vector<1x8x1024xf32>,
    return
  }
  func.func @transform_0(%arg0: i32) -> (i32, i32, i32) {
    %c0_i32 = arith.constant 0 : i32
    %c0_i32_0 = arith.constant 0 : i32
    %c0_i32_1 = arith.constant 0 : i32
    return %arg0, %c0_i32, %c0_i32_0 : i32, i32, i32
  }
  func.func @transform_1(%arg0: i32) -> (i32, i32, i32) {
    %c0_i32 = arith.constant 0 : i32
    %c0_i32_0 = arith.constant 0 : i32
    %c0_i32_1 = arith.constant 0 : i32
    return %arg0, %c0_i32, %c0_i32_0 : i32, i32, i32
  }
  func.func @transform_2(%arg0: i32) -> (i32, i32) {
    %c0_i32 = arith.constant 0 : i32
    %c0_i32_0 = arith.constant 0 : i32
    %c0_i32_1 = arith.constant 0 : i32
    return %c0_i32, %c0_i32_0 : i32, i32
  }
  func.func @transform_3(%arg0: i32) -> (i32, i32) {
    %c0_i32 = arith.constant 0 : i32
    %c0_i32_0 = arith.constant 0 : i32
    %c0_i32_1 = arith.constant 0 : i32
    return %c0_i32, %c0_i32_0 : i32, i32
  }
  func.func @transform_4(%arg0: i32) -> (i32, i32) {
    %c0_i32 = arith.constant 0 : i32
    %c0_i32_0 = arith.constant 0 : i32
    %c0_i32_1 = arith.constant 0 : i32
    return %c0_i32, %c0_i32_0 : i32, i32
  }
  func.func @transform_5(%arg0: i32) -> (i32, i32) {
    %c0_i32 = arith.constant 0 : i32
    %c0_i32_0 = arith.constant 0 : i32
    %c0_i32_1 = arith.constant 0 : i32
    return %c0_i32, %c0_i32_0 : i32, i32
  }
  func.func @transform_6(%arg0: i32) -> (i32, i32) {
    %c0_i32 = arith.constant 0 : i32
    %c0_i32_0 = arith.constant 0 : i32
    %c0_i32_1 = arith.constant 0 : i32
    return %c0_i32, %c0_i32_0 : i32, i32
  }
  func.func @transform_7(%arg0: i32) -> (i32, i32) {
    %c0_i32 = arith.constant 0 : i32
    %c0_i32_0 = arith.constant 0 : i32
    %c0_i32_1 = arith.constant 0 : i32
    return %c0_i32, %c0_i32_0 : i32, i32
  }
  func.func @transform_8(%arg0: i32) -> (i32, i32, i32) {
    %c0_i32 = arith.constant 0 : i32
    %c0_i32_0 = arith.constant 0 : i32
    %c0_i32_1 = arith.constant 0 : i32
    return %arg0, %c0_i32, %c0_i32_0 : i32, i32, i32
  }
}

</mosaic_0001>

<bundles_post_ra>
// kernel: tpu_custom_call.1
= control target key start
LH: loop header
LB: loop body
LE: loop exit
PB: predicated region body
PF: predicated region fallthrough
CT: control target
= control target key end

     0   :  { %s3053_s0 = inlined_call_operand.hbm [shape: f32[2,8,256], index: 0, kind: input, shape index: {}]   ;;  %s3054_s1 = inlined_call_operand.hbm [shape: f32[2,8,256], index: 1, kind: input, shape index: {}]   ;;  %s3055_s2 = inlined_call_operand.hbm [shape: f32[9,256], index: 2, kind: input, shape index: {}]   ;;  %s3056_s3 = inlined_call_operand.vmem [shape: bf16[4,144], index: 3, kind: input, shape index: {}]   ;;  %s3057_s4 = inlined_call_operand.vmem [shape: f32[4,1], index: 4, kind: input, shape index: {}]   ;;  %s3058_s5 = inlined_call_operand.vmem [shape: bf16[8,36], index: 5, kind: input, shape index: {}]   ;;  %s3059_s6 = inlined_call_operand.vmem [shape: f32[8,1], index: 6, kind: input, shape index: {}]   ;;  %s3060_s7 = inlined_call_operand.hbm [shape: bf16[256,1024], index: 7, kind: input, shape index: {}]   ;;  %s3061_s8 = inlined_call_operand.hbm [shape: f32[2,8,1024], index: 8, kind: output, shape index: {}]  }
   0x1   :  { %3069 = sst [smem:[#allocation19_spill]] %s3055_s2 }
   0x2   :  { %3070 = sst [smem:[#allocation20_spill]] %s3060_s7 }
   0x3   :  { %13 = vsyncpa [#allocation3], 0 }
   0x4   :  { %15 = vsyncpa [#allocation3 + $0x1], 0 }
   0x5   :  { %16 = vsyncpa [#allocation6], 0 }
   0x6   :  { %18 = vsyncpa [#allocation6 + $0x1], 0 }
   0x7   :  { %19 = vsyncpa [#allocation9], 0 }
   0x8   :  { %20 = vsyncpa [#allocation4], 0 }
   0x9   :  { %22 = vsyncpa [#allocation4 + $0x1], 0  ;;  %s2419_s27 = smov 0   ;;  %s2421_s28 = smov 0  }
   0xa   :  { %s2423_s29 = smov 0   ;;  %s2425_s30 = smov 0  }
   0xb LB: > { %3071 = sst [smem:[#allocation16_spill]] %s2350_s29  ;;  %s2440_s9 = sadd.s32 4294967295, %s2354_s30   ;;  %s2354_s30 = sphi %s2425_s30, %s3092_s30   ;;  %s2350_s29 = sphi %s2423_s29, %s3097_s29   ;;  %s2346_s28 = sphi %s2421_s28, %s3096_s28   ;;  %s2342_s27 = sphi %s2419_s27, %s3095_s27  }
   0xc   : > { %s1915_s10 = sadd.s32 4294967294, %s2354_s30   ;;  %p48_p0 = scmp.ne.s32.totalorder %s2346_s28, %s2342_s27 }
   0xd   : > { %p3062_p1 = scmp.eq.s32.totalorder %s2440_s9, 0  ;;  %p230_p3 = scmp.eq.s32.totalorder %s1915_s10, 1 }
   0xe   : > { %p1916_p5 = scmp.ge.s32.totalorder %s2354_s30, 1  ;;  %p237_p7 = scmp.lt.s32.totalorder %s2354_s30, 3 }
   0xf   : > { %p2449_p4 = por %p3062_p1, %p48_p0  ;;  %p2454_p6 = por %p230_p3, %p48_p0 }
  0x10   : > { %p2459_p8 = pnand %p1916_p5, %p237_p7  ;;  %s2356_s14 = smov [#allocation7]  }
  0x11   : > { %s3072_s11 = scalar_select %p2449_p4, 1, 0 }
  0x12   : > { %s3073_s12 = scalar_select %p2454_p6, 1, 0 }
  0x13   : > { %s3074_s13 = scalar_select %p2459_p8, 1, 0 }
  0x14   : > { %s249_s15 = sshll.u32 %s2356_s14, 4  ;;  %p2088_p9 = pneg %p2459_p8  ;;  %s2463_s15 = int_to_ptr.vmem [resolvable:$true] %s249_s15 }
  0x15   : > { %s2357_s17 = smov [#allocation8]   ;;  %s3076_s2 = sld [smem:[#allocation19_spill]] }
  0x16   : > { %p2470_p11 = pnand %p2088_p9, %p3062_p1  ;;  %s274_s18 = sshll.u32 %s2357_s17, 4  ;;  %s2474_s18 = int_to_ptr.vmem [resolvable:$true] %s274_s18 }
  0x18   : > { %p2162_p13 = pneg %p2470_p11 }
  0x1b   : > { %s2160_s21 = scalar_lea.hbm %s3076_s2, 512 }
  0x1c   : > { %p2161_p12 = scmp.ne.s32.totalorder %s3076_s2, %s2160_s21  ;;  %p2167_p5 = scmp.lt.u32.totalorder %s2160_s21, %s3076_s2 }
  0x1e   : > { %p2163_p0 = pnand %p2162_p13, %p2161_p12 }
  0x20   : > { %p2164_p3 = pneg %p2163_p0 }
  0x22   : > { %p2169_p7 = pnand %p2167_p5, %p2164_p3 }
  0x24   : > { %2172 = shalt.err (!%p2169_p7)
}
  0x25   : > { %s2173_s26 = scalar_lea.vmem %s2463_s15, 512  ;;  %p2181_p2 = scmp.lt.s32.totalorder %s2463_s15, %s2463_s15 }
  0x26   : > { %p2174_p9 = scmp.ne.s32.totalorder %s2463_s15, %s2173_s26  ;;  %p2182_p12 = scmp.lt.s32.totalorder %s2173_s26, %s2173_s26 }
  0x28   : > { %p2176_p10 = pnand %p2174_p9, %p2162_p13  ;;  %p2183_p0 = por %p2182_p12, %p2181_p2 }
  0x2a   : > { %p2177_p1 = pneg %p2176_p10 }
  0x2c   : > { %p2184_p6 = pnand %p2183_p0, %p2177_p1 }
  0x2e   : > { %2187 = shalt.err (!%p2184_p6)
}
  0x2f   : > { %s2358_s10 = smov 256   ;;  %s2359_s14 = smov 16  }
  0x30   : > { %2091 = dma.hbm_to_vmem [thread:$0]  (!%p2470_p11), %s3076_s2, 512, %s2463_s15, [#allocation6], %s2358_s10, %s2358_s10, %s2359_s14  }
  0x31   : > { %s3077_s7 = sld [smem:[#allocation20_spill]] }
  0x37   : > { %s2188_s22 = scalar_lea.hbm %s3077_s7, 16384 }
  0x38   : > { %p2189_p2 = scmp.ne.s32.totalorder %s3077_s7, %s2188_s22  ;;  %p2195_p10 = scmp.lt.u32.totalorder %s2188_s22, %s3077_s7 }
  0x3a   : > { %p2191_p1 = pnand %p2189_p2, %p2162_p13 }
  0x3c   : > { %p2192_p6 = pneg %p2191_p1 }
  0x3e   : > { %p2197_p3 = pnand %p2195_p10, %p2192_p6 }
  0x40   : > { %2200 = shalt.err (!%p2197_p3)
}
  0x41   : > { %s2201_s15 = scalar_lea.vmem %s2474_s18, 16384  ;;  %p2209_p12 = scmp.lt.s32.totalorder %s2474_s18, %s2474_s18 }
  0x42   : > { %p2202_p5 = scmp.ne.s32.totalorder %s2474_s18, %s2201_s15  ;;  %p2210_p0 = scmp.lt.s32.totalorder %s2201_s15, %s2201_s15 }
  0x44   : > { %p2204_p7 = pnand %p2202_p5, %p2162_p13  ;;  %p2211_p2 = por %p2210_p0, %p2209_p12 }
  0x46   : > { %p2205_p9 = pneg %p2204_p7 }
  0x48   : > { %p2212_p1 = pnand %p2211_p2, %p2205_p9 }
  0x4a   : > { %2215 = shalt.err (!%p2212_p1)
}
  0x4b   : > { %s2360_s10 = smov 512   ;;  %s2361_s14 = smov 32  }
  0x4c   : > { %2094 = dma.hbm_to_vmem [thread:$0]  (!%p2470_p11), %s3077_s7, 16384, %s2474_s18, [#allocation9], %s2360_s10, %s2360_s10, %s2361_s14  }
  0x4d   : > { %s2529_s20 = sadd.s32 1, %s2354_s30   ;;  %s35_s22 = sadd.s32 1, %s2350_s29 }
  0x4e   : > { %3078 = sst [smem:[#allocation17_spill]] %s2529_s20  ;;  %s32_s21 = ssub.s32 %s2354_s30, %s2529_s20 }
  0x4f   : > { %p33_p13 = scmp.eq.s32.totalorder %s32_s21, 0  ;;  %p42_p6 = scmp.ne.s32.totalorder %s2350_s29, %s2346_s28 }
  0x50   : > { %p43_p10 = scmp.eq.s32.totalorder %s2354_s30, 0  ;;  %p3080_p5 = scmp.eq.s32.totalorder %s2440_s9, 1 }
  0x51   : > { %s2538_s23 = scalar_select %p33_p13, %s2350_s29, %s35_s22  }
  0x52   : > { %p44_p3 = por %p43_p10, %p42_p6  ;;  %p2542_p7 = por %p3080_p5, %p42_p6 }
  0x53   : > { %3079 = sst [smem:[#allocation18_spill]] %s2538_s23  ;;  %p2108_p9 = scmp.lt.s32.totalorder %s2354_s30, 2 }
  0x54   : > { %s3081_s24 = scalar_select %p2542_p7, 1, 0 }
  0x55   : > { %s288_s16 = sand.u32 1, %s2350_s29   ;;  %s2071_s25 = sshll.u32 %s2354_s30, 8 }
  0x56   : > { %s2548_s18 = sshll.u32 %s288_s16, 4  ;;  %s2554_s10 = scalar_lea.hbm %s3053_s0, %s2071_s25 }
  0x57   : > { %s292_s14 = scalar_lea.vmem [#allocation2], %s2548_s18  ;;  %p2559_p11 = pnand %p2108_p9, %p44_p3 }
  0x58   : > { %s300_s17 = sshll.u32 %s292_s14, 4  ;;  %s2566_s26 = scalar_lea.hbm %s3054_s1, %s2071_s25  ;;  %s2557_s17 = int_to_ptr.vmem [resolvable:$true] %s300_s17 }
  0x59   : > { %s307_s15 = sand.u32 1, %s2354_s30   ;;  %s289_s2 = scalar_lea.sflag [#allocation3], %s288_s16 }
  0x5a   : > { %s2216_s7 = scalar_lea.hbm %s2554_s10, 256  ;;  %p2218_p0 = pneg %p2559_p11 }
  0x5b   : > { %p2217_p12 = scmp.ne.s32.totalorder %s2554_s10, %s2216_s7  ;;  %s2221_s29 = scalar_lea.hbm %s3053_s0, 512 }
  0x5c   : > { %p2222_p13 = scmp.lt.u32.totalorder %s2554_s10, %s3053_s0  ;;  %p2223_p6 = scmp.lt.u32.totalorder %s2221_s29, %s2216_s7 }
  0x5d   : > { %p2219_p2 = pnand %p2218_p0, %p2217_p12  ;;  %p2225_p3 = scmp.lt.u32.totalorder %s2216_s7, %s2554_s10 }
  0x5e   : > { %p2224_p10 = por %p2223_p6, %p2222_p13 }
  0x5f   : > { %p2220_p1 = pneg %p2219_p2 }
  0x60   : > { %p2226_p5 = por %p2225_p3, %p2224_p10 }
  0x62   : > { %p2227_p9 = pnand %p2226_p5, %p2220_p1 }
  0x64   : > { %2230 = shalt.err (!%p2227_p9)
}
  0x65   : > { %s2231_s16 = scalar_lea.vmem %s2557_s17, 256  ;;  %s2362_s23 = smov [#allocation2]  }
  0x66   : > { %p2232_p12 = scmp.ne.s32.totalorder %s2557_s17, %s2231_s16  ;;  %s2236_s25 = sshll.u32 %s2362_s23, 4  ;;  %s2237_s25 = int_to_ptr.vmem [resolvable:$false] %s2236_s25 }
  0x67   : > { %s2238_s20 = scalar_lea.vmem %s2237_s25, 512  ;;  %p2239_p4 = scmp.lt.s32.totalorder %s2557_s17, %s2237_s25 }
  0x68   : > { %p2234_p2 = pnand %p2232_p12, %p2218_p0  ;;  %p2240_p13 = scmp.lt.s32.totalorder %s2238_s20, %s2231_s16 }
  0x6a   : > { %p2235_p7 = pneg %p2234_p2  ;;  %p2241_p6 = por %p2240_p13, %p2239_p4 }
  0x6c   : > { %p2242_p10 = pnand %p2241_p6, %p2235_p7 }
  0x6e   : > { %2245 = shalt.err (!%p2242_p10)
}
  0x6f   : > { %2098 = dma.hbm_to_vmem [thread:$0]  (!%p2559_p11), %s2554_s10, 256, %s2557_s17, %s289_s2  }
  0x70   : > { %s311_s7 = scalar_lea.vmem [#allocation5], %s2548_s18  ;;  %s308_s22 = scalar_lea.sflag [#allocation6], %s307_s15 }
  0x71   : > { %s319_s29 = sshll.u32 %s311_s7, 4  ;;  %s2246_s14 = scalar_lea.hbm %s2566_s26, 256  ;;  %s320_s29 = int_to_ptr.vmem [resolvable:$true] %s319_s29 }
  0x72   : > { %p2247_p4 = scmp.ne.s32.totalorder %s2566_s26, %s2246_s14  ;;  %s2251_s23 = scalar_lea.hbm %s3054_s1, 512 }
  0x73   : > { %p2252_p3 = scmp.lt.u32.totalorder %s2566_s26, %s3054_s1  ;;  %p2253_p5 = scmp.lt.u32.totalorder %s2251_s23, %s2246_s14 }
  0x74   : > { %p2249_p7 = pnand %p2247_p4, %p2218_p0  ;;  %p2255_p12 = scmp.lt.u32.totalorder %s2246_s14, %s2566_s26 }
  0x75   : > { %p2254_p9 = por %p2253_p5, %p2252_p3 }
  0x76   : > { %p2250_p1 = pneg %p2249_p7 }
  0x77   : > { %p2256_p2 = por %p2255_p12, %p2254_p9 }
  0x79   : > { %p2257_p13 = pnand %p2256_p2, %p2250_p1 }
  0x7b   : > { %2260 = shalt.err (!%p2257_p13)
}
  0x7c   : > { %s2261_s2 = scalar_lea.vmem %s320_s29, 256  ;;  %s2363_s18 = smov [#allocation5]  }
  0x7d   : > { %p2262_p6 = scmp.ne.s32.totalorder %s320_s29, %s2261_s2  ;;  %s2266_s10 = sshll.u32 %s2363_s18, 4  ;;  %s2267_s10 = int_to_ptr.vmem [resolvable:$false] %s2266_s10 }
  0x7e   : > { %s2268_s17 = scalar_lea.vmem %s2267_s10, 512  ;;  %p2269_p7 = scmp.lt.s32.totalorder %s320_s29, %s2267_s10 }
  0x7f   : > { %p2264_p10 = pnand %p2262_p6, %p2218_p0  ;;  %p2270_p8 = scmp.lt.s32.totalorder %s2268_s17, %s2261_s2 }
  0x81   : > { %p2265_p4 = pneg %p2264_p10  ;;  %p2271_p3 = por %p2270_p8, %p2269_p7 }
  0x83   : > { %p2272_p5 = pnand %p2271_p3, %p2265_p4 }
  0x85   : > { %2275 = shalt.err (!%p2272_p5)
}
  0x86   : > { %2101 = dma.hbm_to_vmem [thread:$0]  (!%p2559_p11), %s2566_s26, 256, %s320_s29, %s308_s22  }
  0x87   : > { %p3083_p1 = scmp.ne.s32.totalorder %s3074_s13, 0 }
  0x88   : > { %s2619_s15 = sand.u32 (!%p3083_p1), 1, %s2346_s28   ;;  %p3084_p0 = scmp.ne.s32.totalorder (!%p3083_p1), %s3072_s11, 0 }
  0x89   : > { %328 = sbr.rel (%p3083_p1) target bundleno = 1224 (0x4c8), region = 52  ;;  %s1927_s7 = sshll.u32 (!%p3083_p1), %s2619_s15, 4 }
  0x8a   : > { %s331_s14 = scalar_lea.sflag (!%p3083_p1), [#allocation3], %s2619_s15  ;;  %s334_s21 = scalar_lea.vmem (!%p3083_p1), [#allocation2], %s1927_s7 }
  0x90   : > { %2321 = dma.done.wait (%p3084_p0), %s331_s14, 256  }
  0x91   : > { %2323 = vsyncadd (%p3084_p0), %s331_s14, 4294967040  ;;  %s339_s19 = sand.u32 1, %s2440_s9   ;;  %s343_s13 = scalar_lea.vmem [#allocation5], %s1927_s7 }
  0x92   : > { %s340_s26 = scalar_lea.sflag [#allocation6], %s339_s19 }
  0x93   : > { %2325 = dma.done.wait (%p3084_p0), %s340_s26, 256  }
  0x94   : > { %2327 = vsyncadd (%p3084_p0), %s340_s26, 4294967040  ;;  %p3085_p8 = scmp.eq.s32.totalorder %s2440_s9, 0 }
  0x96   : > { %2329 = dma.done.wait (%p3085_p8), [#allocation6], 512   ;;  %p3086_p11 = pmov %p3085_p8 }
  0x97   : > { %p3087_p9 = pmov %p3085_p8 }
  0x98   : > { %2331 = vsyncadd (%p3086_p11), [#allocation6], 4294966784 }
  0x99   : > { %2333 = dma.done.wait (%p3087_p9), [#allocation9], 16384   ;;  %p3088_p12 = pmov %p3085_p8 }
  0x9a   : > { %v2640_v0 = vld [vmem:[%s343_s13 + $0x8] sm:$0xff]  ;;  %v2642_v1 = vld [vmem:[%s343_s13] sm:$0xff]  ;;  %s2364_s29 = smov 17   ;;  %s2365_s11 = smov 16   ;;  %vm635_vm0 = vcmask 130048   ;;  %v2372_v8 = vmov 0   ;;  %v407_v10 = vlaneseq }
  0x9b   : > { %2335 = vsyncadd (%p3088_p12), [#allocation9], 4294950912  ;;  %403 = vrot.lane.b32.xlu1 %v2640_v0, %s2364_s29  ;;  %399 = vrot.lane.b32.xlu0 %v2642_v1, %s2364_s29  ;;  %v2648_v2 = vld [vmem:[%s334_s21 + $0x8] sm:$0xff]  ;;  %v2650_v3 = vld [vmem:[%s334_s21] sm:$0xff]  ;;  %s2366_s22 = smov 15   ;;  %s2367_s16 = smov 1  }
  0x9c   : > { %v610_v4 = vpack.c.bf16 %v2648_v2, %v2640_v0  ;;  %v609_v5 = vpack.c.bf16 %v2650_v3, %v2642_v1  ;;  %s2368_s23 = smov 127   ;;  %s2369_s25 = smov 113   ;;  %v2711_v6 = vld.sshfl [vmem:[%s3056_s3] sm:$0x33 pattern:$0x76325410]  ;;  %2159 = vset.pattern.permute.xlu0 %v2372_v8  ;;  %835 = vmatprep.mubr.bf16.mxu1 %v2372_v8 }
  0x9d   : > { %s2370_s20 = smov 112   ;;  %v633_v7 = vcombine.high %v2711_v6, %v2711_v6  ;;  %s2371_s10 = smov 111   ;;  %v619_v9 = vld [vmem:[%s3057_s4] sm:$0xf]  ;;  %v2726_v11 = vshrl.u32 %v407_v10, 7  ;;  %v2728_v12 = vand.u32 127, %v407_v10 }
  0x9e   : > { %v2731_v14 = vld [vmem:[#allocation7] sm:$0xff]  ;;  %v2733_v15 = vld [vmem:[#allocation7 + $0x8] sm:$0xff]  ;;  %vm771_vm9 = vcmask 1043456   ;;  %vm796_vm10 = vcmask 1041408   ;;  %vm792_vm11 = vcmask 293888   ;;  %s1931_s13 = sshll.u32 %s2619_s15, 6 }
  0x9f   : > { %405 = vrot.lane.b32.xlu1 %v2648_v2, %s2364_s29  ;;  %401 = vrot.lane.b32.xlu0 %v2650_v3, %s2364_s29  ;;  %v416_v13 = vsub.s32 0, %v2726_v11  ;;  %vm409_vm1 = vcmp.lt.s32.totalorder %v2728_v12, 17  ;;  %v441_v26 = vsub.s32 1, %v2726_v11  ;;  %vm434_vm2 = vcmp.lt.s32.totalorder %v2728_v12, 16  ;;  %p3089_p13 = scmp.ne.s32.totalorder %s3081_s24, 0  ;;  %s2373_s2 = smov [#allocation10]  }
  0xa0   : > { %1935 = vmatprep.mubr.msk.bf16.mxu0 %vm635_vm0, %v633_v7  ;;  %v466_v39 = vsub.s32 2, %v2726_v11  ;;  %vm459_vm3 = vcmp.lt.s32.totalorder %v2728_v12, 15  ;;  %v491_v56 = vsub.s32 3, %v2726_v11  ;;  %vm484_vm4 = vcmp.lt.s32.totalorder %v2728_v12, 1  ;;  %s2280_s18 = sshll.u32 %s2373_s2, 4  ;;  %s2281_s18 = int_to_ptr.vmem [resolvable:$false] %s2280_s18 }
  0xa1   : > { %v2737_v18 = vrot.slane %v2731_v14, %v416_v13  ;;  %v2740_v19 = vrot.slane %v2733_v15, %v416_v13  ;;  %v2757_v35 = vrot.slane %v2731_v14, %v441_v26  ;;  %v2760_v36 = vrot.slane %v2733_v15, %v441_v26 }
  0xa2   : > { %v2777_v52 = vrot.slane %v2731_v14, %v466_v39  ;;  %v2780_v53 = vrot.slane %v2733_v15, %v466_v39  ;;  %vm509_vm5 = vcmp.lt.s32.totalorder %v2728_v12, 127  ;;  %vm534_vm6 = vcmp.lt.s32.totalorder %v2728_v12, 113 }
  0xa3   : > { %428 = vrot.lane.b32.xlu1 %v2650_v3, %s2365_s11  ;;  %426 = vrot.lane.b32.xlu0 %v2642_v1, %s2365_s11  ;;  %vm559_vm7 = vcmp.lt.s32.totalorder %v2728_v12, 112  ;;  %vm584_vm8 = vcmp.lt.s32.totalorder %v2728_v12, 111  ;;  %v682_v12 = vld [vmem:[%s3058_s5] sm:$0xf] }
  0xa7   : > { %432 = vrot.lane.b32.xlu1 %v2648_v2, %s2365_s11  ;;  %430 = vrot.lane.b32.xlu0 %v2640_v0, %s2365_s11 }
  0xab   : > { %453 = vrot.lane.b32.xlu1 %v2650_v3, %s2366_s22  ;;  %451 = vrot.lane.b32.xlu0 %v2642_v1, %s2366_s22 }
  0xaf   : > { %457 = vrot.lane.b32.xlu1 %v2648_v2, %s2366_s22  ;;  %455 = vrot.lane.b32.xlu0 %v2640_v0, %s2366_s22 }
  0xb3   : > { %478 = vrot.lane.b32.xlu1 %v2650_v3, %s2367_s16  ;;  %476 = vrot.lane.b32.xlu0 %v2642_v1, %s2367_s16 }
  0xb7   : > { %482 = vrot.lane.b32.xlu1 %v2648_v2, %s2367_s16  ;;  %480 = vrot.lane.b32.xlu0 %v2640_v0, %s2367_s16 }
  0xbb   : > { %503 = vrot.lane.b32.xlu1 %v2650_v3, %s2368_s23  ;;  %501 = vrot.lane.b32.xlu0 %v2642_v1, %s2368_s23 }
  0xbf   : > { %507 = vrot.lane.b32.xlu1 %v2648_v2, %s2368_s23  ;;  %505 = vrot.lane.b32.xlu0 %v2640_v0, %s2368_s23 }
  0xc3   : > { %528 = vrot.lane.b32.xlu1 %v2650_v3, %s2369_s25  ;;  %526 = vrot.lane.b32.xlu0 %v2642_v1, %s2369_s25 }
  0xc7   : > { %532 = vrot.lane.b32.xlu1 %v2648_v2, %s2369_s25  ;;  %530 = vrot.lane.b32.xlu0 %v2640_v0, %s2369_s25 }
  0xcb   : > { %553 = vrot.lane.b32.xlu1 %v2650_v3, %s2370_s20  ;;  %551 = vrot.lane.b32.xlu0 %v2642_v1, %s2370_s20 }
  0xcf   : > { %557 = vrot.lane.b32.xlu1 %v2648_v2, %s2370_s20  ;;  %555 = vrot.lane.b32.xlu0 %v2640_v0, %s2370_s20 }
  0xd3   : > { %578 = vrot.lane.b32.xlu1 %v2650_v3, %s2371_s10  ;;  %576 = vrot.lane.b32.xlu0 %v2642_v1, %s2371_s10 }
  0xd7   : > { %582 = vrot.lane.b32.xlu1 %v2648_v2, %s2371_s10  ;;  %580 = vrot.lane.b32.xlu0 %v2640_v0, %s2371_s10 }
  0xdb   : > { %622 = vperm.xlu0 %2159, %v619_v9  }
 0x10d   : > { %v404_v16 = vpop.permute.xlu1 %403  ;;  %v400_v17 = vpop.permute.xlu0 %399 }
 0x10e   : > { %v410_v20 = vsel %vm409_vm1, %v400_v17, %v404_v16  ;;  %v412_v21 = vsel %vm409_vm1, %v404_v16, %v400_v17  ;;  %v2797_v16 = vrot.slane %v2731_v14, %v491_v56  ;;  %v2800_v17 = vrot.slane %v2733_v15, %v491_v56 }
 0x10f   : > { %v422_v27 = vmul.f32 %v2737_v18, %v412_v21  ;;  %v423_v29 = vmul.f32 %v2740_v19, %v410_v20 }
 0x111   : > { %v406_v22 = vpop.permute.xlu1 %405  ;;  %v402_v23 = vpop.permute.xlu0 %401 }
 0x112   : > { %v411_v24 = vsel %vm409_vm1, %v402_v23, %v406_v22  ;;  %v413_v25 = vsel %vm409_vm1, %v406_v22, %v402_v23  ;;  %v516_v22 = vsub.s32 5, %v2726_v11 }
 0x113   : > { %v424_v28 = vmul.f32 %v2737_v18, %v413_v25  ;;  %v425_v30 = vmul.f32 %v2740_v19, %v411_v24 }
 0x115   : > { %v429_v31 = vpop.permute.xlu1 %428  ;;  %v427_v32 = vpop.permute.xlu0 %426  ;;  %v602_v33 = vpack.c.bf16 %v425_v30, %v423_v29  ;;  %v601_v34 = vpack.c.bf16 %v424_v28, %v422_v27 }
 0x117   : > { %639 = vmatprep.subr.bf16.mxu0 %v602_v33 }
 0x118   : > { %640 = vmatpush1.bf16.msra.mxu0 %v601_v34 }
 0x119   : > { %v433_v37 = vpop.permute.xlu1 %432  ;;  %v431_v38 = vpop.permute.xlu0 %430 }
 0x11a   : > { %v436_v40 = vsel %vm434_vm2, %v429_v31, %v433_v37  ;;  %v438_v41 = vsel %vm434_vm2, %v433_v37, %v429_v31  ;;  %v435_v42 = vsel %vm434_vm2, %v427_v32, %v431_v38  ;;  %v437_v43 = vsel %vm434_vm2, %v431_v38, %v427_v32 }
 0x11b   : > { %v449_v44 = vmul.f32 %v2757_v35, %v438_v41  ;;  %v450_v45 = vmul.f32 %v2760_v36, %v436_v40  ;;  %v447_v46 = vmul.f32 %v2757_v35, %v437_v43  ;;  %v448_v47 = vmul.f32 %v2760_v36, %v435_v42 }
 0x11c   : > { %v2817_v37 = vrot.slane %v2731_v14, %v516_v22  ;;  %v2820_v38 = vrot.slane %v2733_v15, %v516_v22  ;;  %v541_v41 = vsub.s32 6, %v2726_v11 }
 0x11d   : > { %v454_v48 = vpop.permute.xlu1 %453  ;;  %v452_v49 = vpop.permute.xlu0 %451  ;;  %v604_v50 = vpack.c.bf16 %v450_v45, %v448_v47  ;;  %v603_v51 = vpack.c.bf16 %v449_v44, %v447_v46 }
 0x11f   : > { %641 = vmatprep.subr.bf16.mxu0 %v604_v50 }
 0x120   : > { %642 = vmatpush1.bf16.msra.mxu0 %v603_v51  ;;  %v2843_v51 = vrot.slane %v2731_v14, %v541_v41 }
 0x121   : > { %v458_v54 = vpop.permute.xlu1 %457  ;;  %v456_v55 = vpop.permute.xlu0 %455 }
 0x122   : > { %v461_v57 = vsel %vm459_vm3, %v454_v48, %v458_v54  ;;  %v463_v58 = vsel %vm459_vm3, %v458_v54, %v454_v48  ;;  %v460_v59 = vsel %vm459_vm3, %v452_v49, %v456_v55  ;;  %v462_v60 = vsel %vm459_vm3, %v456_v55, %v452_v49 }
 0x123   : > { %v474_v61 = vmul.f32 %v2777_v52, %v463_v58  ;;  %v475_v62 = vmul.f32 %v2780_v53, %v461_v57  ;;  %v472_v63 = vmul.f32 %v2777_v52, %v462_v60  ;;  %v473_v7 = vmul.f32 %v2780_v53, %v460_v59 }
 0x124   : > { %v2846_v54 = vrot.slane %v2733_v15, %v541_v41  ;;  %v566_v57 = vsub.s32 7, %v2726_v11 }
 0x125   : > { %v479_v8 = vpop.permute.xlu1 %478  ;;  %v477_v9 = vpop.permute.xlu0 %476  ;;  %v606_v10 = vpack.c.bf16 %v475_v62, %v473_v7  ;;  %v605_v13 = vpack.c.bf16 %v474_v61, %v472_v63 }
 0x127   : > { %643 = vmatprep.subr.bf16.mxu0 %v606_v10  ;;  %v2866_v10 = vrot.slane %v2733_v15, %v566_v57 }
 0x128   : > { %644 = vmatpush1.bf16.msra.mxu0 %v605_v13 }
 0x129   : > { %v483_v20 = vpop.permute.xlu1 %482  ;;  %v481_v21 = vpop.permute.xlu0 %480 }
 0x12a   : > { %v486_v23 = vsel %vm484_vm4, %v479_v8, %v483_v20  ;;  %v488_v24 = vsel %vm484_vm4, %v483_v20, %v479_v8  ;;  %v485_v25 = vsel %vm484_vm4, %v477_v9, %v481_v21  ;;  %v487_v26 = vsel %vm484_vm4, %v481_v21, %v477_v9 }
 0x12b   : > { %v499_v27 = vmul.f32 %v2797_v16, %v488_v24  ;;  %v500_v28 = vmul.f32 %v2800_v17, %v486_v23  ;;  %v497_v29 = vmul.f32 %v2797_v16, %v487_v26  ;;  %v498_v30 = vmul.f32 %v2800_v17, %v485_v25 }
 0x12c   : > { %v2863_v9 = vrot.slane %v2731_v14, %v566_v57 }
 0x12d   : > { %v504_v31 = vpop.permute.xlu1 %503  ;;  %v502_v32 = vpop.permute.xlu0 %501  ;;  %v608_v33 = vpack.c.bf16 %v500_v28, %v498_v30  ;;  %v607_v34 = vpack.c.bf16 %v499_v27, %v497_v29 }
 0x12f   : > { %645 = vmatprep.subr.bf16.mxu0 %v608_v33 }
 0x130   : > { %646 = vmatpush1.bf16.msra.mxu0 %v607_v34 }
 0x131   : > { %v508_v39 = vpop.permute.xlu1 %507  ;;  %v506_v40 = vpop.permute.xlu0 %505  ;;  %647 = vmatprep.subr.bf16.mxu0 %v610_v4 }
 0x132   : > { %v511_v42 = vsel %vm509_vm5, %v504_v31, %v508_v39  ;;  %v513_v43 = vsel %vm509_vm5, %v508_v39, %v504_v31  ;;  %v510_v44 = vsel %vm509_vm5, %v502_v32, %v506_v40  ;;  %v512_v45 = vsel %vm509_vm5, %v506_v40, %v502_v32  ;;  %v2881_v31 = vld [vmem:[#allocation7 + $0x10] ss:$0 sm:$0xff]  ;;  %v2883_v32 = vld [vmem:[#allocation7 + $0x18] ss:$0 sm:$0xff] }
 0x133   : > { %v524_v46 = vmul.f32 %v2817_v37, %v511_v42  ;;  %v525_v47 = vmul.f32 %v2820_v38, %v513_v43  ;;  %v522_v0 = vmul.f32 %v2817_v37, %v510_v44  ;;  %v523_v2 = vmul.f32 %v2820_v38, %v512_v45 }
 0x134   : > { %648 = vmatpush1.bf16.msra.mxu0 %v609_v5 }
 0x135   : > { %v529_v4 = vpop.permute.xlu1 %528  ;;  %v527_v48 = vpop.permute.xlu0 %526  ;;  %v612_v49 = vpack.c.bf16 %v525_v47, %v523_v2  ;;  %v611_v50 = vpack.c.bf16 %v524_v46, %v522_v0 }
 0x137   : > { %649 = vmatprep.subr.bf16.mxu0 %v612_v49 }
 0x138   : > { %650 = vmatpush1.bf16.msra.mxu0 %v611_v50 }
 0x139   : > { %v533_v55 = vpop.permute.xlu1 %532  ;;  %v531_v56 = vpop.permute.xlu0 %530 }
 0x13a   : > { %v536_v1 = vsel %vm534_vm6, %v529_v4, %v533_v55  ;;  %v538_v3 = vsel %vm534_vm6, %v533_v55, %v529_v4  ;;  %v535_v5 = vsel %vm534_vm6, %v527_v48, %v531_v56  ;;  %v537_v58 = vsel %vm534_vm6, %v531_v56, %v527_v48 }
 0x13b   : > { %v549_v59 = vmul.f32 %v2843_v51, %v536_v1  ;;  %v550_v60 = vmul.f32 %v2846_v54, %v538_v3  ;;  %v547_v61 = vmul.f32 %v2843_v51, %v535_v5  ;;  %v548_v11 = vmul.f32 %v2846_v54, %v537_v58  ;;  %v849_v3 = vld [vmem:[#allocation8 + $0x8] sm:$0xff] }
 0x13c   : > { %v853_v5 = vld [vmem:[#allocation8 + $0x28] sm:$0xff] }
 0x13d   : > { %v554_v62 = vpop.permute.xlu1 %553  ;;  %v552_v63 = vpop.permute.xlu0 %551  ;;  %v614_v7 = vpack.c.bf16 %v550_v60, %v548_v11  ;;  %v613_v8 = vpack.c.bf16 %v549_v59, %v547_v61  ;;  %v1940_v58 = vcombine.low %v849_v3, %v853_v5  ;;  %v1941_v59 = vcombine.high %v849_v3, %v853_v5  ;;  %v857_v60 = vld [vmem:[#allocation8 + $0x48] sm:$0xff] }
 0x13e   : > { %v861_v61 = vld [vmem:[#allocation8 + $0x68] sm:$0xff] }
 0x13f   : > { %651 = vmatprep.subr.bf16.mxu0 %v614_v7  ;;  %v1949_v11 = vcombine.high %v857_v60, %v861_v61  ;;  %v869_v7 = vld [vmem:[#allocation8 + $0xa8] sm:$0xff] }
 0x140   : > { %652 = vmatpush1.bf16.msra.mxu0 %v613_v8  ;;  %v941_v3 = vld [vmem:[#allocation8 + $0x2e8] sm:$0xff] }
 0x141   : > { %v558_v13 = vpop.permute.xlu1 %557  ;;  %v556_v20 = vpop.permute.xlu0 %555 }
 0x142   : > { %v561_v21 = vsel %vm559_vm7, %v554_v62, %v558_v13  ;;  %v563_v22 = vsel %vm559_vm7, %v558_v13, %v554_v62  ;;  %v560_v23 = vsel %vm559_vm7, %v552_v63, %v556_v20  ;;  %v562_v24 = vsel %vm559_vm7, %v556_v20, %v552_v63  ;;  %v865_v63 = vld [vmem:[#allocation8 + $0x88] sm:$0xff] }
 0x143   : > { %v574_v14 = vmul.f32 %v2863_v9, %v561_v21  ;;  %v575_v15 = vmul.f32 %v2866_v10, %v563_v22  ;;  %v572_v25 = vmul.f32 %v2863_v9, %v560_v23  ;;  %v573_v26 = vmul.f32 %v2866_v10, %v562_v24  ;;  %v873_v20 = vld [vmem:[#allocation8 + $0xc8] sm:$0xff] }
 0x144   : > { %v1948_v62 = vcombine.low %v857_v60, %v861_v61  ;;  %v1957_v8 = vcombine.high %v865_v63, %v869_v7  ;;  %v1956_v13 = vcombine.low %v865_v63, %v869_v7  ;;  %v877_v21 = vld [vmem:[#allocation8 + $0xe8] sm:$0xff] }
 0x145   : > { %v579_v27 = vpop.permute.xlu1 %578  ;;  %v577_v28 = vpop.permute.xlu0 %576  ;;  %v616_v29 = vpack.c.bf16 %v575_v15, %v573_v26  ;;  %v615_v30 = vpack.c.bf16 %v574_v14, %v572_v25  ;;  %v1965_v22 = vcombine.high %v873_v20, %v877_v21  ;;  %v1964_v23 = vcombine.low %v873_v20, %v877_v21  ;;  %v881_v24 = vld [vmem:[#allocation8 + $0x108] sm:$0xff] }
 0x146   : > { %v885_v14 = vld [vmem:[#allocation8 + $0x128] sm:$0xff] }
 0x147   : > { %653 = vmatprep.subr.bf16.mxu0 %v616_v29  ;;  %v1973_v15 = vcombine.high %v881_v24, %v885_v14  ;;  %v1972_v25 = vcombine.low %v881_v24, %v885_v14  ;;  %v889_v26 = vld [vmem:[#allocation8 + $0x148] sm:$0xff] }
 0x148   : > { %654 = vmatpush1.bf16.msra.mxu0 %v615_v30  ;;  %v897_v30 = vld [vmem:[#allocation8 + $0x188] sm:$0xff] }
 0x149   : > { %v583_v33 = vpop.permute.xlu1 %582  ;;  %v581_v34 = vpop.permute.xlu0 %580  ;;  %v949_v60 = vld [vmem:[#allocation8 + $0x328] sm:$0xff] }
 0x14a   : > { %v586_v39 = vsel %vm584_vm8, %v579_v27, %v583_v33  ;;  %v588_v40 = vsel %vm584_vm8, %v583_v33, %v579_v27  ;;  %v585_v41 = vsel %vm584_vm8, %v577_v28, %v581_v34  ;;  %v587_v42 = vsel %vm584_vm8, %v581_v34, %v577_v28  ;;  %v893_v27 = vld [vmem:[#allocation8 + $0x168] sm:$0xff] }
 0x14b   : > { %v599_v43 = vmul.f32 %v2881_v31, %v586_v39  ;;  %v600_v44 = vmul.f32 %v2883_v32, %v588_v40  ;;  %v597_v45 = vmul.f32 %v2881_v31, %v585_v41  ;;  %v598_v46 = vmul.f32 %v2883_v32, %v587_v42  ;;  %v901_v33 = vld [vmem:[#allocation8 + $0x1a8] sm:$0xff] }
 0x14c   : > { %v1981_v28 = vcombine.high %v889_v26, %v893_v27  ;;  %v1980_v29 = vcombine.low %v889_v26, %v893_v27  ;;  %v1989_v34 = vcombine.high %v897_v30, %v901_v33  ;;  %v1988_v39 = vcombine.low %v897_v30, %v901_v33  ;;  %v905_v40 = vld [vmem:[#allocation8 + $0x1c8] sm:$0xff] }
 0x14d   : > { %v618_v47 = vpack.c.bf16 %v600_v44, %v598_v46  ;;  %v617_v0 = vpack.c.bf16 %v599_v43, %v597_v45  ;;  %v909_v41 = vld [vmem:[#allocation8 + $0x1e8] sm:$0xff] }
 0x14e   : > { %v1997_v42 = vcombine.high %v905_v40, %v909_v41  ;;  %v1996_v43 = vcombine.low %v905_v40, %v909_v41  ;;  %v913_v44 = vld [vmem:[#allocation8 + $0x208] sm:$0xff] }
 0x14f   : > { %655 = vmatprep.subr.bf16.mxu0 %v618_v47  ;;  %v917_v45 = vld [vmem:[#allocation8 + $0x228] sm:$0xff] }
 0x150   : > { %656 = vmatpush1.bf16.msra.mxu0 %v617_v0  ;;  %v2005_v46 = vcombine.high %v913_v44, %v917_v45  ;;  %v2004_v47 = vcombine.low %v913_v44, %v917_v45  ;;  %v921_v0 = vld [vmem:[#allocation8 + $0x248] sm:$0xff] }
 0x151   : > { %1657 = vmatprep.subr.bf16.mxu0 %v1941_v59  ;;  %v945_v59 = vld [vmem:[#allocation8 + $0x308] sm:$0xff] }
 0x152   : > { %v2037_v61 = vcombine.high %v945_v59, %v949_v60  ;;  %v957_v63 = vld [vmem:[#allocation8 + $0x368] sm:$0xff] }
 0x153   : > { %672 = vmatmul.mubr.bf16.vlgmr.msra.gmra.mrb[0].mxu0 %v2711_v6  ;;  %v786_v6 = vld [vmem:[%s3059_s6] sm:$0xff] }
 0x154   : > { %1658 = vmatpush1.bf16.msra.mxu0 %v1940_v58 }
 0x155   : > { %1659 = vmatprep.subr.bf16.mxu0 %v1949_v11  ;;  %v2036_v11 = vcombine.low %v945_v59, %v949_v60 }
 0x158   : > { %1660 = vmatpush1.bf16.msra.mxu0 %v1948_v62  ;;  %v953_v62 = vld [vmem:[#allocation8 + $0x348] sm:$0xff] }
 0x159   : > { %1661 = vmatprep.subr.bf16.mxu0 %v1957_v8  ;;  %v2045_v7 = vcombine.high %v953_v62, %v957_v63  ;;  %v2044_v8 = vcombine.low %v953_v62, %v957_v63 }
 0x15a   : > { %v623_v2 = vpop.permute.xlu0 %622 }
 0x15c   : > { %1662 = vmatpush1.bf16.msra.mxu0 %v1956_v13 }
 0x15d   : > { %1663 = vmatprep.subr.bf16.mxu0 %v1965_v22 }
 0x160   : > { %1664 = vmatpush1.bf16.msra.mxu0 %v1964_v23 }
 0x161   : > { %1665 = vmatprep.subr.bf16.mxu0 %v1973_v15 }
 0x164   : > { %1666 = vmatpush1.bf16.msra.mxu0 %v1972_v25 }
 0x165   : > { %1667 = vmatprep.subr.bf16.mxu0 %v1981_v28 }
 0x168   : > { %1668 = vmatpush1.bf16.msra.mxu0 %v1980_v29 }
 0x169   : > { %1669 = vmatprep.subr.bf16.mxu0 %v1989_v34 }
 0x16c   : > { %1670 = vmatpush1.bf16.msra.mxu0 %v1988_v39 }
 0x16d   : > { %1671 = vmatprep.subr.bf16.mxu0 %v1997_v42 }
 0x170   : > { %1672 = vmatpush1.bf16.msra.mxu0 %v1996_v43 }
 0x171   : > { %1673 = vmatprep.subr.bf16.mxu0 %v2005_v46 }
 0x174   : > { %1674 = vmatpush1.bf16.msra.mxu0 %v2004_v47 }
 0x226   : > { %v673_v4 = vpop.f32.mrb[0].mxu0 }
 0x227   : > { %v674_v48 = vadd.f32 %v673_v4, %v623_v2  ;;  %v675_v49 = vpop.f32.mrb[1].mxu0 }
 0x228   : > { %v677_v50 = vpop.f32.mrb[2].mxu0  ;;  %v676_v56 = vadd.f32 %v675_v49, %v623_v2  ;;  %v925_v2 = vld [vmem:[#allocation8 + $0x268] sm:$0xff] }
 0x229   : > { %v2898_v55 = vmax.f32 %v674_v48, 0.0  ;;  %v678_v57 = vpop.f32.mrb[3].mxu0  ;;  %v2013_v4 = vcombine.high %v921_v0, %v925_v2  ;;  %v2012_v48 = vcombine.low %v921_v0, %v925_v2  ;;  %v929_v49 = vld [vmem:[#allocation8 + $0x288] sm:$0xff] }
 0x22a   : > { %v2904_v1 = vmax.f32 %v676_v56, 0.0  ;;  %v933_v50 = vld [vmem:[#allocation8 + $0x2a8] sm:$0xff] }
 0x22b   : > { %707 = vrot.lane.b32.xlu0 %v2898_v55, %s2367_s16  ;;  %691 = vrot.lane.b32.xlu1 %v2898_v55, %s2365_s11  ;;  %v2021_v56 = vcombine.high %v929_v49, %v933_v50  ;;  %v2020_v57 = vcombine.low %v929_v49, %v933_v50 }
 0x22c   : > { %1675 = vmatprep.subr.bf16.mxu0 %v2013_v4 }
 0x22d   : > { %1676 = vmatpush1.bf16.msra.mxu0 %v2012_v48 }
 0x22e   : > { %1677 = vmatprep.subr.bf16.mxu0 %v2021_v56 }
 0x22f   : > { %683 = vrot.lane.b32.xlu0 %v2898_v55, %s2364_s29  ;;  %693 = vrot.lane.b32.xlu1 %v2904_v1, %s2365_s11  ;;  %s2073_s11 = sshll.u32 %s2440_s9, 10  ;;  %s1789_s9 = scalar_lea.sflag [#allocation4], %s2619_s15 }
 0x231   : > { %1678 = vmatpush1.bf16.msra.mxu0 %v2020_v57 }
 0x233   : > { %699 = vrot.lane.b32.xlu0 %v2898_v55, %s2366_s22  ;;  %709 = vrot.lane.b32.xlu1 %v2904_v1, %s2367_s16 }
 0x237   : > { %715 = vrot.lane.b32.xlu0 %v2898_v55, %s2368_s23  ;;  %685 = vrot.lane.b32.xlu1 %v2904_v1, %s2364_s29  ;;  %s388_s29 = scalar_lea.vmem [#allocation10], %s1931_s13 }
 0x23b   : > { %731 = vrot.lane.b32.xlu0 %v2898_v55, %s2370_s20  ;;  %701 = vrot.lane.b32.xlu1 %v2904_v1, %s2366_s22  ;;  %s1803_s22 = sshll.u32 %s388_s29, 4  ;;  %s3011_s22 = int_to_ptr.vmem [resolvable:$true] %s1803_s22 }
 0x23c   : > { %p2283_p4 = scmp.lt.s32.totalorder %s3011_s22, %s2281_s18 }
 0x23f   : > { %723 = vrot.lane.b32.xlu0 %v2898_v55, %s2369_s25  ;;  %717 = vrot.lane.b32.xlu1 %v2904_v1, %s2368_s23 }
 0x243   : > { %739 = vrot.lane.b32.xlu0 %v2898_v55, %s2371_s10  ;;  %733 = vrot.lane.b32.xlu1 %v2904_v1, %s2370_s20  ;;  %s2276_s20 = scalar_lea.vmem %s3011_s22, 1024 }
 0x244   : > { %p2277_p2 = scmp.ne.s32.totalorder %s3011_s22, %s2276_s20 }
 0x246   : > { %p2278_p6 = pnand %p2277_p2, %p3089_p13 }
 0x247   : > { %789 = vperm.xlu0 %2159, %v786_v6   ;;  %725 = vrot.lane.b32.xlu1 %v2904_v1, %s2369_s25  ;;  %v937_v6 = vld [vmem:[#allocation8 + $0x2c8] sm:$0xff]  ;;  %s3009_s25 = scalar_lea.hbm %s3061_s8, %s2073_s11 }
 0x248   : > { %v2029_v5 = vcombine.high %v937_v6, %v941_v3  ;;  %v2028_v58 = vcombine.low %v937_v6, %v941_v3  ;;  %p2279_p10 = pneg %p2278_p6 }
 0x24a   : > { %1679 = vmatprep.subr.bf16.mxu0 %v2029_v5 }
 0x24b   : > { %741 = vrot.lane.b32.xlu1 %v2904_v1, %s2371_s10  ;;  %1680 = vmatpush1.bf16.msra.mxu0 %v2028_v58  ;;  %s2282_s10 = scalar_lea.vmem %s2281_s18, 2048 }
 0x24c   : > { %1681 = vmatprep.subr.bf16.mxu0 %v2037_v61  ;;  %p2284_p7 = scmp.lt.s32.totalorder %s2282_s10, %s2276_s20 }
 0x24e   : > { %p2285_p3 = por %p2284_p7, %p2283_p4 }
 0x24f   : > { %1682 = vmatpush1.bf16.msra.mxu0 %v2036_v11 }
 0x250   : > { %1683 = vmatprep.subr.bf16.mxu0 %v2045_v7  ;;  %p2286_p5 = pnand %p2285_p3, %p2279_p10 }
 0x253   : > { %1684 = vmatpush1.bf16.msra.mxu0 %v2044_v8 }
 0x29d   : > { %v708_v13 = vpop.permute.xlu0 %707  ;;  %v692_v20 = vpop.permute.xlu1 %691 }
 0x2a1   : > { %v684_v21 = vpop.permute.xlu0 %683  ;;  %v694_v22 = vpop.permute.xlu1 %693 }
 0x2a2   : > { %v695_v14 = vsel %vm434_vm2, %v692_v20, %v694_v22  ;;  %v696_v15 = vsel %vm434_vm2, %v694_v22, %v692_v20 }
 0x2a3   : > { %v697_v28 = vmul.f32 %v696_v15, %v2757_v35  ;;  %v698_v29 = vmul.f32 %v695_v14, %v2760_v36 }
 0x2a5   : > { %v700_v23 = vpop.permute.xlu0 %699  ;;  %v710_v24 = vpop.permute.xlu1 %709  ;;  %v749_v35 = vrot.slane %v697_v28, 4  ;;  %v750_v44 = vrot.slane %v698_v29, 4 }
 0x2a6   : > { %v711_v25 = vsel %vm484_vm4, %v708_v13, %v710_v24  ;;  %v712_v26 = vsel %vm484_vm4, %v710_v24, %v708_v13 }
 0x2a7   : > { %v713_v34 = vmul.f32 %v712_v26, %v2797_v16  ;;  %v714_v39 = vmul.f32 %v711_v25, %v2800_v17  ;;  %v852_v26 = vld [vmem:[#allocation8 + $0x20] sm:$0xff] }
 0x2a9   : > { %v686_v27 = vpop.permute.xlu1 %685  ;;  %v716_v40 = vpop.permute.xlu0 %715  ;;  %v755_v46 = vrot.slane %v713_v34, 4  ;;  %v756_v47 = vrot.slane %v714_v39, 4  ;;  %v864_v34 = vld [vmem:[#allocation8 + $0x80] sm:$0xff] }
 0x2aa   : > { %v687_v30 = vsel %vm409_vm1, %v684_v21, %v686_v27  ;;  %v688_v33 = vsel %vm409_vm1, %v686_v27, %v684_v21  ;;  %v868_v39 = vld [vmem:[#allocation8 + $0xa0] sm:$0xff] }
 0x2ab   : > { %v689_v41 = vmul.f32 %v688_v33, %v2737_v18  ;;  %v690_v42 = vmul.f32 %v687_v30, %v2740_v19  ;;  %v856_v30 = vld [vmem:[#allocation8 + $0x40] sm:$0xff] }
 0x2ac   : > { %v860_v33 = vld [vmem:[#allocation8 + $0x60] sm:$0xff] }
 0x2ad   : > { %v702_v43 = vpop.permute.xlu1 %701  ;;  %v732_v0 = vpop.permute.xlu0 %731  ;;  %v773_v19 = vsel %vm771_vm9, %v690_v42, %v750_v44  ;;  %v772_v4 = vsel %vm771_vm9, %v689_v41, %v749_v35  ;;  %v1955_v41 = vcombine.high %v864_v34, %v868_v39  ;;  %v872_v42 = vld [vmem:[#allocation8 + $0xc0] sm:$0xff]  ;;  %v1954_v35 = vcombine.low %v864_v34, %v868_v39  ;;  %v850_v39 = vld [vmem:[#allocation8 + $0x10] sm:$0xff] }
 0x2ae   : > { %v703_v36 = vsel %vm459_vm3, %v700_v23, %v702_v43  ;;  %v704_v45 = vsel %vm459_vm3, %v702_v43, %v700_v23  ;;  %v876_v43 = vld [vmem:[#allocation8 + $0xe0] sm:$0xff] }
 0x2af   : > { %v705_v16 = vmul.f32 %v704_v45, %v2777_v52  ;;  %v706_v17 = vmul.f32 %v703_v36, %v2780_v53  ;;  %v1963_v44 = vcombine.high %v872_v42, %v876_v43  ;;  %v880_v36 = vld [vmem:[#allocation8 + $0x100] sm:$0xff] }
 0x2b0   : > { %v884_v45 = vld [vmem:[#allocation8 + $0x120] sm:$0xff] }
 0x2b1   : > { %v718_v18 = vpop.permute.xlu1 %717  ;;  %v775_v2 = vsel %vm771_vm9, %v706_v17, %v756_v47  ;;  %v774_v48 = vsel %vm771_vm9, %v705_v16, %v755_v46  ;;  %v724_v58 = vpop.permute.xlu0 %723  ;;  %v1962_v46 = vcombine.low %v872_v42, %v876_v43  ;;  %v1971_v47 = vcombine.high %v880_v36, %v884_v45  ;;  %v888_v16 = vld [vmem:[#allocation8 + $0x140] sm:$0xff]  ;;  %v855_v43 = vld [vmem:[#allocation8 + $0x38] sm:$0xff] }
 0x2b2   : > { %v719_v49 = vsel %vm509_vm5, %v716_v40, %v718_v18  ;;  %v720_v50 = vsel %vm509_vm5, %v718_v18, %v716_v40  ;;  %v781_v56 = vpack.c.bf16 %v775_v2, %v773_v19  ;;  %v780_v52 = vpack.c.bf16 %v774_v48, %v772_v4  ;;  %v892_v17 = vld [vmem:[#allocation8 + $0x160] sm:$0xff] }
 0x2b3   : > { %v721_v53 = vmul.f32 %v719_v49, %v2817_v37  ;;  %v722_v57 = vmul.f32 %v720_v50, %v2820_v38  ;;  %v1946_v40 = vcombine.low %v856_v30, %v860_v33  ;;  %v1979_v18 = vcombine.high %v888_v16, %v892_v17  ;;  %v896_v19 = vld [vmem:[#allocation8 + $0x180] sm:$0xff] }
 0x2b4   : > { %803 = vmatprep.subr.bf16.mxu1 %v781_v56  ;;  %v900_v2 = vld [vmem:[#allocation8 + $0x1a0] sm:$0xff]  ;;  %v1978_v4 = vcombine.low %v888_v16, %v892_v17 }
 0x2b5   : > { %804 = vmatpush1.bf16.msra.mxu1 %v780_v52  ;;  %v734_v6 = vpop.permute.xlu1 %733  ;;  %v761_v61 = vrot.slane %v721_v53, 4  ;;  %v762_v11 = vrot.slane %v722_v57, 4  ;;  %v740_v20 = vpop.permute.xlu0 %739  ;;  %v1987_v48 = vcombine.high %v896_v19, %v900_v2  ;;  %v904_v49 = vld [vmem:[#allocation8 + $0x1c0] sm:$0xff]  ;;  %v1986_v56 = vcombine.low %v896_v19, %v900_v2 }
 0x2b6   : > { %v735_v3 = vsel %vm559_vm7, %v732_v0, %v734_v6  ;;  %v736_v5 = vsel %vm559_vm7, %v734_v6, %v732_v0  ;;  %v1970_v0 = vcombine.low %v880_v36, %v884_v45  ;;  %v908_v50 = vld [vmem:[#allocation8 + $0x1e0] sm:$0xff] }
 0x2b7   : > { %v737_v59 = vmul.f32 %v735_v3, %v2863_v9  ;;  %v738_v60 = vmul.f32 %v736_v5, %v2866_v10  ;;  %v777_v9 = vsel %vm771_vm9, %v2904_v1, %v762_v11  ;;  %v776_v22 = vsel %vm771_vm9, %v2898_v55, %v761_v61  ;;  %v848_v1 = vld [vmem:[#allocation8] sm:$0xff] }
 0x2b8   : > { %v1939_v28 = vcombine.high %v848_v1, %v852_v26  ;;  %v1995_v52 = vcombine.high %v904_v49, %v908_v50  ;;  %v912_v53 = vld [vmem:[#allocation8 + $0x200] sm:$0xff]  ;;  %v1994_v6 = vcombine.low %v904_v49, %v908_v50  ;;  %v859_v49 = vld [vmem:[#allocation8 + $0x58] sm:$0xff] }
 0x2b9   : > { %v726_v62 = vpop.permute.xlu1 %725  ;;  %v767_v63 = vrot.slane %v737_v59, 4  ;;  %v768_v7 = vrot.slane %v738_v60, 4  ;;  %v916_v57 = vld [vmem:[#allocation8 + $0x220] sm:$0xff]  ;;  %v863_v50 = vld [vmem:[#allocation8 + $0x78] sm:$0xff] }
 0x2ba   : > { %v727_v37 = vsel %vm534_vm6, %v724_v58, %v726_v62  ;;  %v728_v38 = vsel %vm534_vm6, %v726_v62, %v724_v58  ;;  %v2003_v3 = vcombine.high %v912_v53, %v916_v57  ;;  %v920_v5 = vld [vmem:[#allocation8 + $0x240] sm:$0xff]  ;;  %v2002_v59 = vcombine.low %v912_v53, %v916_v57  ;;  %v866_v53 = vld [vmem:[#allocation8 + $0x90] sm:$0xff] }
 0x2bb   : > { %v729_v8 = vmul.f32 %v727_v37, %v2843_v51  ;;  %v730_v13 = vmul.f32 %v728_v38, %v2846_v54  ;;  %v924_v58 = vld [vmem:[#allocation8 + $0x260] sm:$0xff] }
 0x2bc   : > { %v2011_v60 = vcombine.high %v920_v5, %v924_v58  ;;  %v928_v61 = vld [vmem:[#allocation8 + $0x280] sm:$0xff]  ;;  %v2010_v62 = vcombine.low %v920_v5, %v924_v58  ;;  %v867_v5 = vld [vmem:[#allocation8 + $0x98] sm:$0xff] }
 0x2bd   : > { %v742_v21 = vpop.permute.xlu1 %741  ;;  %v779_v10 = vsel %vm771_vm9, %v730_v13, %v768_v7  ;;  %v778_v23 = vsel %vm771_vm9, %v729_v8, %v767_v63  ;;  %v932_v11 = vld [vmem:[#allocation8 + $0x2a0] sm:$0xff]  ;;  %v871_v58 = vld [vmem:[#allocation8 + $0xb8] sm:$0xff] }
 0x2be   : > { %v743_v24 = vsel %vm584_vm8, %v740_v20, %v742_v21  ;;  %v744_v51 = vsel %vm584_vm8, %v742_v21, %v740_v20  ;;  %v783_v14 = vpack.c.bf16 %v779_v10, %v777_v9  ;;  %v782_v54 = vpack.c.bf16 %v778_v23, %v776_v22  ;;  %v936_v38 = vld [vmem:[#allocation8 + $0x2c0] sm:$0xff] }
 0x2bf   : > { %v745_v15 = vmul.f32 %v2881_v31, %v743_v24  ;;  %v746_v25 = vmul.f32 %v2883_v32, %v744_v51  ;;  %v1938_v31 = vcombine.low %v848_v1, %v852_v26  ;;  %v1947_v32 = vcombine.high %v856_v30, %v860_v33  ;;  %v940_v63 = vld [vmem:[#allocation8 + $0x2e0] sm:$0xff]  ;;  %v965_v1 = vld [vmem:[#allocation8 + $0x3a8] sm:$0xff] }
 0x2c0   : > { %805 = vmatprep.subr.bf16.mxu1 %v783_v14  ;;  %v2019_v37 = vcombine.high %v928_v61, %v932_v11  ;;  %v2018_v7 = vcombine.low %v928_v61, %v932_v11  ;;  %v2027_v8 = vcombine.high %v936_v38, %v940_v63  ;;  %v944_v13 = vld [vmem:[#allocation8 + $0x300] sm:$0xff]  ;;  %v2026_v21 = vcombine.low %v936_v38, %v940_v63  ;;  %v969_v30 = vld [vmem:[#allocation8 + $0x3c8] sm:$0xff]  ;;  %v875_v38 = vld [vmem:[#allocation8 + $0xd8] sm:$0xff] }
 0x2c1   : > { %v784_v27 = vpack.c.bf16 %v745_v15, %v745_v15  ;;  %v785_v55 = vpack.c.bf16 %v746_v25, %v746_v25  ;;  %806 = vmatpush1.bf16.msra.mxu1 %v782_v54  ;;  %v948_v20 = vld [vmem:[#allocation8 + $0x320] sm:$0xff]  ;;  %v961_v15 = vld [vmem:[#allocation8 + $0x388] sm:$0xff]  ;;  %v1961_v11 = vcombine.high %v867_v5, %v871_v58  ;;  %v879_v63 = vld [vmem:[#allocation8 + $0xf8] sm:$0xff] }
 0x2c2   : > { %v2035_v9 = vcombine.high %v944_v13, %v948_v20  ;;  %v952_v10 = vld [vmem:[#allocation8 + $0x340] sm:$0xff]  ;;  %v2034_v23 = vcombine.low %v944_v13, %v948_v20  ;;  %v1969_v20 = vcombine.high %v875_v38, %v879_v63 }
 0x2c3   : > { %1936 = vmatprep.subr.msk.bf16.mxu1 %vm796_vm10, %v785_v55  ;;  %v798_v29 = vsel %vm796_vm10, %v784_v27, 0  ;;  %v956_v22 = vld [vmem:[#allocation8 + $0x360] sm:$0xff]  ;;  %v2052_v27 = vcombine.low %v961_v15, %v965_v1  ;;  %v2053_v55 = vcombine.high %v961_v15, %v965_v1  ;;  %v894_v15 = vld [vmem:[#allocation8 + $0x170] sm:$0xff]  ;;  %v895_v1 = vld [vmem:[#allocation8 + $0x178] sm:$0xff] }
 0x2c4   : > { %v2043_v24 = vcombine.high %v952_v10, %v956_v22  ;;  %v2042_v51 = vcombine.low %v952_v10, %v956_v22  ;;  %v960_v14 = vld [vmem:[#allocation8 + $0x380] sm:$0xff]  ;;  %v883_v10 = vld [vmem:[#allocation8 + $0x118] sm:$0xff] }
 0x2c5   : > { %808 = vmatpush1.bf16.msra.mxu1 %v798_v29  ;;  %v964_v54 = vld [vmem:[#allocation8 + $0x3a0] sm:$0xff]  ;;  %1685 = vmatprep.subr.bf16.mxu0 %v2053_v55  ;;  %v887_v22 = vld [vmem:[#allocation8 + $0x138] sm:$0xff] }
 0x2c6   : > { %1616 = vmatprep.subr.bf16.mxu1 %v1939_v28  ;;  %v2051_v25 = vcombine.high %v960_v14, %v964_v54  ;;  %v2050_v26 = vcombine.low %v960_v14, %v964_v54  ;;  %v968_v28 = vld [vmem:[#allocation8 + $0x3c0] sm:$0xff]  ;;  %1686 = vmatpush1.bf16.msra.mxu0 %v2052_v27  ;;  %v790_v45 = vpop.permute.xlu0 %789  ;;  %v1977_v14 = vcombine.high %v883_v10, %v887_v22  ;;  %v890_v54 = vld [vmem:[#allocation8 + $0x150] sm:$0xff] }
 0x2c7   : > { %v972_v29 = vld [vmem:[#allocation8 + $0x3e0] sm:$0xff]  ;;  %v1976_v27 = vcombine.low %v883_v10, %v887_v22  ;;  %v1983_v55 = vcombine.high %v890_v54, %v894_v15  ;;  %v950_v10 = vld [vmem:[#allocation8 + $0x330] sm:$0xff]  ;;  %v947_v22 = vld [vmem:[#allocation8 + $0x318] sm:$0xff] }
 0x2c8   : > { %1937 = vmatmul.mubr.msk.bf16.vlgmr.msra.gmra.mrb[0].mxu1 %vm792_vm11, %v682_v12  ;;  %v2059_v33 = vcombine.high %v968_v28, %v972_v29  ;;  %v973_v12 = vld [vmem:[#allocation8 + $0x3e8] sm:$0xff] }
 0x2c9   : > { %1617 = vmatpush1.bf16.msra.mxu1 %v1938_v31  ;;  %v2058_v31 = vcombine.low %v968_v28, %v972_v29  ;;  %v2061_v34 = vcombine.high %v969_v30, %v973_v12  ;;  %v898_v29 = vld [vmem:[#allocation8 + $0x190] sm:$0xff] }
 0x2ca   : > { %1618 = vmatprep.subr.bf16.mxu1 %v1947_v32  ;;  %v2060_v32 = vcombine.low %v969_v30, %v973_v12  ;;  %v902_v30 = vld [vmem:[#allocation8 + $0x1b0] sm:$0xff]  ;;  %v903_v12 = vld [vmem:[#allocation8 + $0x1b8] sm:$0xff] }
 0x2cb   : > { %1687 = vmatprep.subr.bf16.mxu0 %v2061_v34  ;;  %v1991_v34 = vcombine.high %v898_v29, %v902_v30 }
 0x2cc   : > { %1688 = vmatpush1.bf16.msra.mxu0 %v2060_v32 }
 0x2cd   : > { %1619 = vmatpush1.bf16.msra.mxu1 %v1946_v40  ;;  %v854_v40 = vld [vmem:[#allocation8 + $0x30] sm:$0xff] }
 0x2ce   : > { %1620 = vmatprep.subr.bf16.mxu1 %v1955_v41  ;;  %v851_v41 = vld [vmem:[#allocation8 + $0x18] sm:$0xff]  ;;  %v1943_v42 = vcombine.high %v850_v39, %v854_v40 }
 0x2cf   : > { %v1945_v36 = vcombine.high %v851_v41, %v855_v43 }
 0x2d1   : > { %1621 = vmatpush1.bf16.msra.mxu1 %v1954_v35  ;;  %v1942_v35 = vcombine.low %v850_v39, %v854_v40  ;;  %1739 = vmatprep.subr.bf16.mxu0 %v1945_v36  ;;  %v906_v40 = vld [vmem:[#allocation8 + $0x1d0] sm:$0xff] }
 0x2d2   : > { %1622 = vmatprep.subr.bf16.mxu1 %v1963_v44  ;;  %v1944_v44 = vcombine.low %v851_v41, %v855_v43  ;;  %v910_v41 = vld [vmem:[#allocation8 + $0x1f0] sm:$0xff]  ;;  %v911_v43 = vld [vmem:[#allocation8 + $0x1f8] sm:$0xff] }
 0x2d3   : > { %v1999_v36 = vcombine.high %v906_v40, %v910_v41 }
 0x2d5   : > { %1623 = vmatpush1.bf16.msra.mxu1 %v1962_v46 }
 0x2d6   : > { %1624 = vmatprep.subr.bf16.mxu1 %v1971_v47 }
 0x2d9   : > { %1625 = vmatpush1.bf16.msra.mxu1 %v1970_v0 }
 0x2da   : > { %1626 = vmatprep.subr.bf16.mxu1 %v1979_v18 }
 0x2dd   : > { %1627 = vmatpush1.bf16.msra.mxu1 %v1978_v4  ;;  %v858_v4 = vld [vmem:[#allocation8 + $0x50] sm:$0xff] }
 0x2de   : > { %1628 = vmatprep.subr.bf16.mxu1 %v1987_v48  ;;  %v862_v48 = vld [vmem:[#allocation8 + $0x70] sm:$0xff] }
 0x2df   : > { %v1951_v57 = vcombine.high %v858_v4, %v862_v48 }
 0x2e1   : > { %1629 = vmatpush1.bf16.msra.mxu1 %v1986_v56 }
 0x2e2   : > { %1630 = vmatprep.subr.bf16.mxu1 %v1995_v52 }
 0x2e5   : > { %1631 = vmatpush1.bf16.msra.mxu1 %v1994_v6  ;;  %v1953_v6 = vcombine.high %v859_v49, %v863_v50 }
 0x2e6   : > { %1632 = vmatprep.subr.bf16.mxu1 %v2003_v3  ;;  %v870_v3 = vld [vmem:[#allocation8 + $0xb0] sm:$0xff] }
 0x2e7   : > { %v1959_v61 = vcombine.high %v866_v53, %v870_v3 }
 0x2e9   : > { %1633 = vmatpush1.bf16.msra.mxu1 %v2002_v59  ;;  %v1950_v59 = vcombine.low %v858_v4, %v862_v48  ;;  %v922_v4 = vld [vmem:[#allocation8 + $0x250] sm:$0xff] }
 0x2ea   : > { %1634 = vmatprep.subr.bf16.mxu1 %v2011_v60  ;;  %v1952_v60 = vcombine.low %v859_v49, %v863_v50  ;;  %v926_v48 = vld [vmem:[#allocation8 + $0x270] sm:$0xff]  ;;  %v923_v49 = vld [vmem:[#allocation8 + $0x258] sm:$0xff] }
 0x2eb   : > { %v927_v50 = vld [vmem:[#allocation8 + $0x278] sm:$0xff] }
 0x2ed   : > { %1635 = vmatpush1.bf16.msra.mxu1 %v2010_v62  ;;  %v874_v62 = vld [vmem:[#allocation8 + $0xd0] sm:$0xff] }
 0x2ee   : > { %1636 = vmatprep.subr.bf16.mxu1 %v2019_v37  ;;  %v878_v37 = vld [vmem:[#allocation8 + $0xf0] sm:$0xff] }
 0x2ef   : > { %v1967_v13 = vcombine.high %v874_v62, %v878_v37 }
 0x2f1   : > { %1637 = vmatpush1.bf16.msra.mxu1 %v2018_v7  ;;  %v1958_v7 = vcombine.low %v866_v53, %v870_v3  ;;  %v930_v3 = vld [vmem:[#allocation8 + $0x290] sm:$0xff] }
 0x2f2   : > { %1638 = vmatprep.subr.bf16.mxu1 %v2027_v8  ;;  %v1960_v8 = vcombine.low %v867_v5, %v871_v58  ;;  %v934_v5 = vld [vmem:[#allocation8 + $0x2b0] sm:$0xff]  ;;  %v931_v58 = vld [vmem:[#allocation8 + $0x298] sm:$0xff] }
 0x2f5   : > { %1639 = vmatpush1.bf16.msra.mxu1 %v2026_v21  ;;  %v882_v21 = vld [vmem:[#allocation8 + $0x110] sm:$0xff] }
 0x2f6   : > { %1640 = vmatprep.subr.bf16.mxu1 %v2035_v9  ;;  %v886_v9 = vld [vmem:[#allocation8 + $0x130] sm:$0xff] }
 0x2f9   : > { %1641 = vmatpush1.bf16.msra.mxu1 %v2034_v23  ;;  %v1966_v23 = vcombine.low %v874_v62, %v878_v37  ;;  %v938_v37 = vld [vmem:[#allocation8 + $0x2d0] sm:$0xff] }
 0x2fa   : > { %1642 = vmatprep.subr.bf16.mxu1 %v2043_v24  ;;  %v1968_v24 = vcombine.low %v875_v38, %v879_v63  ;;  %v942_v38 = vld [vmem:[#allocation8 + $0x2f0] sm:$0xff]  ;;  %v939_v63 = vld [vmem:[#allocation8 + $0x2d8] sm:$0xff] }
 0x2fd   : > { %1643 = vmatpush1.bf16.msra.mxu1 %v2042_v51  ;;  %v1975_v51 = vcombine.high %v882_v21, %v886_v9 }
 0x2fe   : > { %1644 = vmatprep.subr.bf16.mxu1 %v2051_v25  ;;  %v891_v25 = vld [vmem:[#allocation8 + $0x158] sm:$0xff] }
 0x2ff   : > { %v1985_v28 = vcombine.high %v891_v25, %v895_v1  ;;  %v1984_v32 = vcombine.low %v891_v25, %v895_v1  ;;  %v958_v25 = vld [vmem:[#allocation8 + $0x370] sm:$0xff]  ;;  %v955_v1 = vld [vmem:[#allocation8 + $0x358] sm:$0xff] }
 0x301   : > { %1645 = vmatpush1.bf16.msra.mxu1 %v2050_v26  ;;  %v1974_v26 = vcombine.low %v882_v21, %v886_v9  ;;  %v946_v9 = vld [vmem:[#allocation8 + $0x310] sm:$0xff] }
 0x302   : > { %1646 = vmatprep.subr.bf16.mxu1 %v2059_v33  ;;  %v899_v33 = vld [vmem:[#allocation8 + $0x198] sm:$0xff] }
 0x303   : > { %v1993_v39 = vcombine.high %v899_v33, %v903_v12 }
 0x305   : > { %1647 = vmatpush1.bf16.msra.mxu1 %v2058_v31  ;;  %v1982_v31 = vcombine.low %v890_v54, %v894_v15  ;;  %v954_v15 = vld [vmem:[#allocation8 + $0x350] sm:$0xff] }
 0x306   : > { %1698 = vmatprep.subr.bf16.mxu1 %v1943_v42  ;;  %v907_v42 = vld [vmem:[#allocation8 + $0x1d8] sm:$0xff] }
 0x39b   : > { %v837_v46 = vpop.f32.mrb[0].mxu1 }
 0x39c   : > { %v838_v47 = vadd.f32 %v837_v46, %v790_v45  ;;  %v839_v16 = vpop.f32.mrb[1].mxu1  ;;  %v914_v46 = vld [vmem:[#allocation8 + $0x210] sm:$0xff] }
 0x39d   : > { %v840_v17 = vadd.f32 %v839_v16, %v790_v45  ;;  %v841_v0 = vpop.f32.mrb[2].mxu1  ;;  %v2001_v45 = vcombine.high %v907_v42, %v911_v43  ;;  %v915_v16 = vld [vmem:[#allocation8 + $0x218] sm:$0xff] }
 0x39e   : > { %v844_v18 = vmax.f32 %v838_v47, 0.0  ;;  %v842_v19 = vpop.f32.mrb[3].mxu1  ;;  %v918_v47 = vld [vmem:[#allocation8 + $0x230] sm:$0xff]  ;;  %v1998_v0 = vcombine.low %v906_v40, %v910_v41 }
 0x39f   : > { %v845_v2 = vmax.f32 %v840_v17, 0.0  ;;  %v919_v17 = vld [vmem:[#allocation8 + $0x238] sm:$0xff]  ;;  %v2007_v19 = vcombine.high %v914_v46, %v918_v47  ;;  %v970_v41 = vld [vmem:[#allocation8 + $0x3d0] sm:$0xff] }
 0x3a0   : > { %v2998_v52 = vpack.c.bf16 %v844_v18, %v844_v18  ;;  %v2000_v18 = vcombine.low %v907_v42, %v911_v43  ;;  %v2008_v53 = vcombine.low %v915_v16, %v919_v17  ;;  %v974_v42 = vld [vmem:[#allocation8 + $0x3f0] sm:$0xff]  ;;  %v971_v43 = vld [vmem:[#allocation8 + $0x3d8] sm:$0xff] }
 0x3a1   : > { %v847_v56 = vpack.c.bf16 %v845_v2, %v845_v2  ;;  %v2009_v2 = vcombine.high %v915_v16, %v919_v17 }
 0x3a3   : > { %1648 = vmatprep.mubr.bf16.mxu1 %v847_v56  ;;  %1689 = vmatprep.mubr.bf16.mxu0 %v847_v56 }
 0x3a4   : > { %1649 = vmatmul.mubr.bf16.vlgmr.msra.gmra.mrb[4].mxu1 %v2998_v52  ;;  %1690 = vmatmul.mubr.bf16.vlgmr.msra.gmra.mrb[4].mxu0 %v2998_v52 }
 0x3a5   : > { %1699 = vmatpush1.bf16.msra.mxu1 %v1942_v35  ;;  %1740 = vmatpush1.bf16.msra.mxu0 %v1944_v44  ;;  %v1990_v35 = vcombine.low %v898_v29, %v902_v30  ;;  %v1992_v44 = vcombine.low %v899_v33, %v903_v12  ;;  %v962_v30 = vld [vmem:[#allocation8 + $0x390] sm:$0xff]  ;;  %v963_v12 = vld [vmem:[#allocation8 + $0x398] sm:$0xff] }
 0x3a6   : > { %1730 = vmatprep.mubr.bf16.mxu1 %v847_v56  ;;  %1771 = vmatprep.mubr.bf16.mxu0 %v847_v56  ;;  %v2006_v56 = vcombine.low %v914_v46, %v918_v47  ;;  %v966_v33 = vld [vmem:[#allocation8 + $0x3b0] sm:$0xff]  ;;  %v2062_v47 = vcombine.low %v970_v41, %v974_v42 }
 0x3a7   : > { %1700 = vmatprep.subr.bf16.mxu1 %v1951_v57  ;;  %1741 = vmatprep.subr.bf16.mxu0 %v1953_v6  ;;  %v2015_v57 = vcombine.high %v922_v4, %v926_v48  ;;  %v2017_v6 = vcombine.high %v923_v49, %v927_v50 }
 0x3a9   : > { %1701 = vmatpush1.bf16.msra.mxu1 %v1950_v59  ;;  %1742 = vmatpush1.bf16.msra.mxu0 %v1952_v60  ;;  %v935_v59 = vld [vmem:[#allocation8 + $0x2b8] sm:$0xff]  ;;  %v2014_v60 = vcombine.low %v922_v4, %v926_v48 }
 0x3aa   : > { %1702 = vmatprep.subr.bf16.mxu1 %v1959_v61  ;;  %1743 = vmatprep.subr.bf16.mxu0 %v1961_v11  ;;  %v2016_v61 = vcombine.low %v923_v49, %v927_v50  ;;  %v2023_v11 = vcombine.high %v930_v3, %v934_v5  ;;  %v2025_v62 = vcombine.high %v931_v58, %v935_v59 }
 0x3ad   : > { %1703 = vmatpush1.bf16.msra.mxu1 %v1958_v7  ;;  %1744 = vmatpush1.bf16.msra.mxu0 %v1960_v8  ;;  %v943_v7 = vld [vmem:[#allocation8 + $0x2f8] sm:$0xff]  ;;  %v2022_v8 = vcombine.low %v930_v3, %v934_v5 }
 0x3ae   : > { %1704 = vmatprep.subr.bf16.mxu1 %v1967_v13  ;;  %1745 = vmatprep.subr.bf16.mxu0 %v1969_v20  ;;  %v2024_v13 = vcombine.low %v931_v58, %v935_v59  ;;  %v2031_v20 = vcombine.high %v938_v37, %v942_v38  ;;  %v2033_v21 = vcombine.high %v939_v63, %v943_v7 }
 0x3b1   : > { %1705 = vmatpush1.bf16.msra.mxu1 %v1966_v23  ;;  %1746 = vmatpush1.bf16.msra.mxu0 %v1968_v24  ;;  %v951_v23 = vld [vmem:[#allocation8 + $0x338] sm:$0xff]  ;;  %v2030_v24 = vcombine.low %v938_v37, %v942_v38 }
 0x3b2   : > { %1706 = vmatprep.subr.bf16.mxu1 %v1975_v51  ;;  %1747 = vmatprep.subr.bf16.mxu0 %v1977_v14  ;;  %v2032_v51 = vcombine.low %v939_v63, %v943_v7  ;;  %v2039_v14 = vcombine.high %v946_v9, %v950_v10  ;;  %v2041_v54 = vcombine.high %v947_v22, %v951_v23 }
 0x3b5   : > { %1707 = vmatpush1.bf16.msra.mxu1 %v1974_v26  ;;  %1748 = vmatpush1.bf16.msra.mxu0 %v1976_v27  ;;  %v959_v26 = vld [vmem:[#allocation8 + $0x378] sm:$0xff]  ;;  %v2038_v27 = vcombine.low %v946_v9, %v950_v10 }
 0x3b6   : > { %1708 = vmatprep.subr.bf16.mxu1 %v1983_v55  ;;  %1749 = vmatprep.subr.bf16.mxu0 %v1985_v28  ;;  %v2040_v55 = vcombine.low %v947_v22, %v951_v23  ;;  %v2047_v28 = vcombine.high %v954_v15, %v958_v25  ;;  %v2049_v29 = vcombine.high %v955_v1, %v959_v26 }
 0x3b9   : > { %1709 = vmatpush1.bf16.msra.mxu1 %v1982_v31  ;;  %1750 = vmatpush1.bf16.msra.mxu0 %v1984_v32  ;;  %v967_v31 = vld [vmem:[#allocation8 + $0x3b8] sm:$0xff]  ;;  %v2046_v32 = vcombine.low %v954_v15, %v958_v25 }
 0x3ba   : > { %1710 = vmatprep.subr.bf16.mxu1 %v1991_v34  ;;  %1751 = vmatprep.subr.bf16.mxu0 %v1993_v39  ;;  %v2048_v34 = vcombine.low %v955_v1, %v959_v26  ;;  %v2055_v39 = vcombine.high %v962_v30, %v966_v33  ;;  %v2057_v40 = vcombine.high %v963_v12, %v967_v31 }
 0x3bd   : > { %1711 = vmatpush1.bf16.msra.mxu1 %v1990_v35  ;;  %1752 = vmatpush1.bf16.msra.mxu0 %v1992_v44  ;;  %v975_v35 = vld [vmem:[#allocation8 + $0x3f8] sm:$0xff]  ;;  %v2054_v44 = vcombine.low %v962_v30, %v966_v33 }
 0x3be   : > { %1712 = vmatprep.subr.bf16.mxu1 %v1999_v36  ;;  %1753 = vmatprep.subr.bf16.mxu0 %v2001_v45  ;;  %v2056_v36 = vcombine.low %v963_v12, %v967_v31  ;;  %v2063_v45 = vcombine.high %v970_v41, %v974_v42  ;;  %v2065_v46 = vcombine.high %v971_v43, %v975_v35 }
 0x3bf   : > { %v2064_v16 = vcombine.low %v971_v43, %v975_v35 }
 0x3c1   : > { %1713 = vmatpush1.bf16.msra.mxu1 %v1998_v0  ;;  %1754 = vmatpush1.bf16.msra.mxu0 %v2000_v18 }
 0x3c2   : > { %1714 = vmatprep.subr.bf16.mxu1 %v2007_v19  ;;  %1755 = vmatprep.subr.bf16.mxu0 %v2009_v2 }
 0x3c5   : > { %1715 = vmatpush1.bf16.msra.mxu1 %v2006_v56  ;;  %1756 = vmatpush1.bf16.msra.mxu0 %v2008_v53 }
 0x3c6   : > { %1716 = vmatprep.subr.bf16.mxu1 %v2015_v57  ;;  %1757 = vmatprep.subr.bf16.mxu0 %v2017_v6 }
 0x3c9   : > { %1717 = vmatpush1.bf16.msra.mxu1 %v2014_v60  ;;  %1758 = vmatpush1.bf16.msra.mxu0 %v2016_v61 }
 0x3ca   : > { %1718 = vmatprep.subr.bf16.mxu1 %v2023_v11  ;;  %1759 = vmatprep.subr.bf16.mxu0 %v2025_v62 }
 0x3cd   : > { %1719 = vmatpush1.bf16.msra.mxu1 %v2022_v8  ;;  %1760 = vmatpush1.bf16.msra.mxu0 %v2024_v13 }
 0x3ce   : > { %1720 = vmatprep.subr.bf16.mxu1 %v2031_v20  ;;  %1761 = vmatprep.subr.bf16.mxu0 %v2033_v21 }
 0x3d1   : > { %1721 = vmatpush1.bf16.msra.mxu1 %v2030_v24  ;;  %1762 = vmatpush1.bf16.msra.mxu0 %v2032_v51 }
 0x3d2   : > { %1722 = vmatprep.subr.bf16.mxu1 %v2039_v14  ;;  %1763 = vmatprep.subr.bf16.mxu0 %v2041_v54 }
 0x3d5   : > { %1723 = vmatpush1.bf16.msra.mxu1 %v2038_v27  ;;  %1764 = vmatpush1.bf16.msra.mxu0 %v2040_v55 }
 0x3d6   : > { %1724 = vmatprep.subr.bf16.mxu1 %v2047_v28  ;;  %1765 = vmatprep.subr.bf16.mxu0 %v2049_v29 }
 0x3d9   : > { %1725 = vmatpush1.bf16.msra.mxu1 %v2046_v32  ;;  %1766 = vmatpush1.bf16.msra.mxu0 %v2048_v34 }
 0x3da   : > { %1726 = vmatprep.subr.bf16.mxu1 %v2055_v39  ;;  %1767 = vmatprep.subr.bf16.mxu0 %v2057_v40 }
 0x3dd   : > { %1727 = vmatpush1.bf16.msra.mxu1 %v2054_v44  ;;  %1768 = vmatpush1.bf16.msra.mxu0 %v2056_v36 }
 0x3de   : > { %1728 = vmatprep.subr.bf16.mxu1 %v2063_v45  ;;  %1769 = vmatprep.subr.bf16.mxu0 %v2065_v46 }
 0x3e1   : > { %1729 = vmatpush1.bf16.msra.mxu1 %v2062_v47  ;;  %1770 = vmatpush1.bf16.msra.mxu0 %v2064_v16 }
 0x3e4   : > { %1731 = vmatmul.mubr.bf16.vlgmr.msra.gmra.mrb[8].mxu1 %v2998_v52  ;;  %1772 = vmatmul.mubr.bf16.vlgmr.msra.gmra.mrb[8].mxu0 %v2998_v52 }
 0x477   : > { %v1650_v17 = vpop.f32.mrb[4].mxu1  ;;  %v1691_v0 = vpop.f32.mrb[4].mxu0 }
 0x478   : > { %1780 = vst [vmem:[%s388_s29] sm:$0xff] %v1650_v17  ;;  %1782 = vst [vmem:[%s388_s29 + $0x10] sm:$0xff] %v1691_v0  ;;  %v1652_v18 = vpop.f32.mrb[5].mxu1  ;;  %v1693_v19 = vpop.f32.mrb[5].mxu0 }
 0x479   : > { %1781 = vst [vmem:[%s388_s29 + $0x8] sm:$0xff] %v1652_v18  ;;  %1783 = vst [vmem:[%s388_s29 + $0x18] sm:$0xff] %v1693_v19  ;;  %v1654_v2 = vpop.f32.mrb[6].mxu1  ;;  %v1695_v4 = vpop.f32.mrb[6].mxu0 }
 0x47a   : > { %v1655_v48 = vpop.f32.mrb[7].mxu1  ;;  %v1696_v49 = vpop.f32.mrb[7].mxu0 }
 0x4b7   : > { %v1732_v50 = vpop.f32.mrb[8].mxu1  ;;  %v1773_v56 = vpop.f32.mrb[8].mxu0 }
 0x4b8   : > { %1784 = vst [vmem:[%s388_s29 + $0x20] sm:$0xff] %v1732_v50  ;;  %1786 = vst [vmem:[%s388_s29 + $0x30] sm:$0xff] %v1773_v56  ;;  %v1734_v52 = vpop.f32.mrb[9].mxu1  ;;  %v1775_v53 = vpop.f32.mrb[9].mxu0 }
 0x4b9   : > { %1785 = vst [vmem:[%s388_s29 + $0x28] sm:$0xff] %v1734_v52  ;;  %1787 = vst [vmem:[%s388_s29 + $0x38] sm:$0xff] %v1775_v53  ;;  %v1736_v57 = vpop.f32.mrb[10].mxu1  ;;  %v1777_v6 = vpop.f32.mrb[10].mxu0 }
 0x4ba   : > { %v1737_v3 = vpop.f32.mrb[11].mxu1  ;;  %v1778_v5 = vpop.f32.mrb[11].mxu0 }
 0x4bb   : > { %2289 = shalt.err (!%p2286_p5)
}
 0x4bc   : > { %s2290_s15 = scalar_lea.hbm %s3009_s25, 1024  ;;  %s2294_s14 = scalar_lea.hbm %s3061_s8, 2048 }
 0x4bd   : > { %p2291_p1 = scmp.ne.s32.totalorder %s3009_s25, %s2290_s15  ;;  %p2295_p11 = scmp.lt.u32.totalorder %s3009_s25, %s3061_s8 }
 0x4be   : > { %p2296_p9 = scmp.lt.u32.totalorder %s2294_s14, %s2290_s15  ;;  %p2298_p2 = scmp.lt.u32.totalorder %s2290_s15, %s3009_s25 }
 0x4bf   : > { %p2292_p0 = pnand %p2291_p1, %p3089_p13 }
 0x4c0   : > { %p2297_p12 = por %p2296_p9, %p2295_p11 }
 0x4c1   : > { %p2293_p8 = pneg %p2292_p0 }
 0x4c2   : > { %p2299_p6 = por %p2298_p2, %p2297_p12 }
 0x4c4   : > { %p2300_p10 = pnand %p2299_p6, %p2293_p8 }
 0x4c6   : > { %2303 = shalt.err (!%p2300_p10)
}
 0x4c7   : > { %2086 = dma.vmem_to_hbm [thread:$0]  (%p3089_p13), %s3011_s22, 1024, %s3009_s25, %s1789_s9  }
 0x4c8 PF: > { %s1815_s26 = sand.u32 1, %s2342_s27   ;;  %p3090_p4 = scmp.ne.s32.totalorder %s3073_s12, 0 }
 0x4c9   : > { %p3091_p7 = scmp.ge.s32.totalorder %s2354_s30, 2  ;;  %s1816_s13 = scalar_lea.sflag [#allocation4], %s1815_s26 }
 0x4cb   : > { %p2103_p3 = pnand %p3091_p7, %p3090_p4 }
 0x4cd   : > { %2337 = dma.done.wait (!%p2103_p3), %s1816_s13, 1024  }
 0x4ce   : > { %2339 = vsyncadd (!%p2103_p3), %s1816_s13, 4294966272  ;;  %s3092_s30 = sld [smem:[#allocation17_spill]]  ;;  %s3093_s29 = sld [smem:[#allocation16_spill]] }
 0x4cf   : > { %s3094_s11 = sld [smem:[#allocation18_spill]]  ;;  %s3095_s27 = smov %s2346_s28 }
 0x4d4   : > { %p25_p5 = scmp.ge.s32.totalorder %s3092_s30, 4   ;;  %s3096_s28 = smov %s3093_s29 }
 0x4d5   : > { %s3097_s29 = smov %s3094_s11 }
 0x4d6   :  { %27 = sbr.rel (!%p25_p5) target bundleno = 11 (0xb), region = 118 }
 0x4dd   :  { %1821 = vsyncpa [#allocation3], 1 }
 0x4de   :  { %1823 = vsyncpa [#allocation3 + $0x1], 1 }
 0x4df   :  { %1824 = vsyncpa [#allocation6], 1 }
 0x4e0   :  { %1826 = vsyncpa [#allocation6 + $0x1], 1 }
 0x4e1   :  { %1827 = vsyncpa [#allocation9], 1 }
 0x4e2   :  { %1828 = vsyncpa [#allocation4], 1 }
 0x4e3   :  { %1830 = vsyncpa [#allocation4 + $0x1], 1 }

</bundles_post_ra>
